<compile_context>
chip_gen: v7x
topology: tpu7x:2x2x1
jax: 0.10.0
libtpu: 0.0.40
codegen_flags: <defaults>
</compile_context>

<pallas_src>
import functools

import jax
import jax.numpy as jnp
from jax import lax
from jax.experimental import pallas as pl
from jax.experimental.pallas import tpu as pltpu

EPS = 1e-6                      # Annotated-Transformer LayerNorm eps
COMPUTE_DTYPE = jnp.bfloat16    # MXU operand dtype (f32 accumulation everywhere)


# --------------------------- helpers -----------------------------------------

def _row_tile(n):
    """Largest convenient row tile that divides n (multiple of 8 when possible)."""
    for t in (512, 256, 128, 64, 32, 16, 8):
        if n % t == 0:
            return t
    return n


def _prep_mask(mask, batch, tq, tk):
    """(1|B, 1, Tq|1, Tk) float mask -> (1|B, Tq, Tk) int32 (no per-head broadcast)."""
    mb = mask.shape[0]
    m = jnp.broadcast_to(mask, (mb, 1, tq, tk))
    return m.reshape(mb, tq, tk).astype(jnp.int32)


# --------------------------- Pallas kernels ----------------------------------

def _proj_kernel(*refs, n_out, has_ln, compute_dtype):
    """[optional LayerNorm] followed by n_out fused linear projections.

    Ref layout: x, [ln_a, ln_b], (w_0, bias_0) ... (w_{n-1}, bias_{n-1}),
                out_0 ... out_{n-1}
    """
    idx = 0
    x_ref = refs[idx]; idx += 1
    if has_ln:
        a_ref, b_ref = refs[idx], refs[idx + 1]
        idx += 2
    wb_refs = refs[idx: idx + 2 * n_out]
    out_refs = refs[idx + 2 * n_out:]

    xf = x_ref[...].astype(jnp.float32)                       # (tm, D)
    if has_ln:
        d = xf.shape[-1]
        mean = jnp.mean(xf, axis=-1, keepdims=True)
        # torch's x.std(-1) is unbiased (ddof=1); eps is added to std (not var).
        var = jnp.sum((xf - mean) ** 2, axis=-1, keepdims=True) / (d - 1)
        inv = pl.reciprocal(jnp.sqrt(var) + EPS)              # EUP, exact
        xf = a_ref[...] * (xf - mean) * inv + b_ref[...]
    xc = xf.astype(compute_dtype)

    for j in range(n_out):
        w = wb_refs[2 * j][...]                               # (D, Dout) bf16
        bias = wb_refs[2 * j + 1][...]                        # (1, Dout) f32
        y = jnp.dot(xc, w, preferred_element_type=jnp.float32) + bias
        out_refs[j][...] = y.astype(out_refs[j].dtype)


def _mha_oproj_res_kernel(q_ref, k_ref, v_ref, mask_ref, wo_ref, bo_ref,
                          xres_ref, o_ref, *, n_heads, scale, compute_dtype):
    """Multi-head SDPA + output projection + residual add for one batch row.

    All heads are processed in-kernel (lane-dense (Tq, D) output); the attention
    intermediate never touches HBM.  out = x + concat_h(A_h V_h) @ Wo + bo
                                         = x + sum_h (A_h V_h) @ Wo[h*dk:(h+1)*dk].
    """
    q = q_ref[0]                                              # (Tq, D) bf16
    k = k_ref[0]                                              # (Tk, D) bf16
    v = v_ref[0]                                              # (Tk, D) bf16
    m = mask_ref[0]                                           # (Tq, Tk) int32
    wo = wo_ref[...]                                          # (D, D)  bf16
    d_model = q.shape[-1]
    dk = d_model // n_heads

    acc = xres_ref[0].astype(jnp.float32) + bo_ref[...]       # residual + bias, f32
    for h in range(n_heads):
        sl = slice(h * dk, (h + 1) * dk)
        qh, kh, vh = q[:, sl], k[:, sl], v[:, sl]
        # scores = qh @ kh^T (contract last dims; no explicit transpose of K)
        s = lax.dot_general(qh, kh, (((1,), (1,)), ((), ())),
                            preferred_element_type=jnp.float32) * scale
        s = jnp.where(m == 0, jnp.float32(-1e9), s)           # masked_fill(mask==0, -1e9)
        s = s - jnp.max(s, axis=-1, keepdims=True)
        p = jnp.exp(s)
        p = p * pl.reciprocal(jnp.sum(p, axis=-1, keepdims=True), approx=True)
        oh = lax.dot_general(p.astype(compute_dtype), vh, (((1,), (0,)), ((), ())),
                             preferred_element_type=jnp.float32)        # (Tq, dk)
        acc = acc + lax.dot_general(oh.astype(compute_dtype), wo[sl, :],
                                    (((1,), (0,)), ((), ())),
                                    preferred_element_type=jnp.float32)  # (Tq, D)
    o_ref[0] = acc.astype(o_ref.dtype)


def _ln_ffn_res_kernel(x_ref, a_ref, b_ref, w1_ref, b1_ref, w2_ref, b2_ref,
                       o_ref, *, compute_dtype):
    """out = x + ReLU(LN(x) @ W1 + b1) @ W2 + b2  (dropout = identity)."""
    x = x_ref[...].astype(jnp.float32)                        # (tm, D)
    d = x.shape[-1]
    mean = jnp.mean(x, axis=-1, keepdims=True)
    var = jnp.sum((x - mean) ** 2, axis=-1, keepdims=True) / (d - 1)
    inv = pl.reciprocal(jnp.sqrt(var) + EPS)
    xn = (a_ref[...] * (x - mean) * inv + b_ref[...]).astype(compute_dtype)

    h = jnp.dot(xn, w1_ref[...], preferred_element_type=jnp.float32) + b1_ref[...]
    h = jnp.maximum(h, 0.0).astype(compute_dtype)             # ReLU
    y = jnp.dot(h, w2_ref[...], preferred_element_type=jnp.float32) + b2_ref[...]
    o_ref[...] = (x + y).astype(o_ref.dtype)


# --------------------------- Pallas wrappers ----------------------------------

def ln_proj_pallas(x2d, ln_a, ln_b, weights, biases, *, has_ln):
    """Fused (optional) LayerNorm + N linear projections over a (N_rows, D) slab."""
    n_rows, d = x2d.shape
    tm = _row_tile(n_rows)
    n = len(weights)

    in_specs = [pl.BlockSpec((tm, d), lambda i: (i, 0))]
    args = [x2d]
    if has_ln:
        in_specs += [pl.BlockSpec((1, d), lambda i: (0, 0)),
                     pl.BlockSpec((1, d), lambda i: (0, 0))]
        args += [ln_a.reshape(1, d), ln_b.reshape(1, d)]

    out_shapes, out_specs = [], []
    for w, bias in zip(weights, biases):
        dout = w.shape[1]
        in_specs += [pl.BlockSpec((d, dout), lambda i: (0, 0)),
                     pl.BlockSpec((1, dout), lambda i: (0, 0))]
        args += [w.astype(COMPUTE_DTYPE), bias.reshape(1, dout)]
        out_shapes.append(jax.ShapeDtypeStruct((n_rows, dout), COMPUTE_DTYPE))
        out_specs.append(pl.BlockSpec((tm, dout), lambda i: (i, 0)))

    kern = functools.partial(_proj_kernel, n_out=n, has_ln=has_ln,
                             compute_dtype=COMPUTE_DTYPE)
    return pl.pallas_call(
        kern,
        out_shape=tuple(out_shapes),
        grid=(n_rows // tm,),
        in_specs=in_specs,
        out_specs=tuple(out_specs),
        compiler_params=pltpu.CompilerParams(
            dimension_semantics=("parallel",)),
    )(*args)


def mha_oproj_res_pallas(q, k, v, mask, wo, bo, x_res, n_heads):
    """q:(B,Tq,D) k/v:(B,Tk,D) bf16, mask:(1|B,Tq,Tk) int32, x_res:(B,Tq,D) f32."""
    b, tq, d = q.shape
    tk = k.shape[1]
    mb = mask.shape[0]
    scale = 1.0 / float(d // n_heads) ** 0.5

    mask_map = (lambda i: (i, 0, 0)) if mb == b else (lambda i: (0, 0, 0))
    kern = functools.partial(_mha_oproj_res_kernel, n_heads=n_heads, scale=scale,
                             compute_dtype=COMPUTE_DTYPE)
    return pl.pallas_call(
        kern,
        out_shape=jax.ShapeDtypeStruct((b, tq, d), jnp.float32),
        grid=(b,),
        in_specs=[pl.BlockSpec((1, tq, d), lambda i: (i, 0, 0)),
                  pl.BlockSpec((1, tk, d), lambda i: (i, 0, 0)),
                  pl.BlockSpec((1, tk, d), lambda i: (i, 0, 0)),
                  pl.BlockSpec((1, tq, tk), mask_map),
                  pl.BlockSpec((d, d), lambda i: (0, 0)),
                  pl.BlockSpec((1, d), lambda i: (0, 0)),
                  pl.BlockSpec((1, tq, d), lambda i: (i, 0, 0))],
        out_specs=pl.BlockSpec((1, tq, d), lambda i: (i, 0, 0)),
        compiler_params=pltpu.CompilerParams(
            dimension_semantics=("parallel",)),
    )(q, k, v, mask, wo.astype(COMPUTE_DTYPE), bo.reshape(1, d), x_res)


def ln_ffn_res_pallas(x2d, a, b, w1, b1, w2, b2):
    n_rows, d = x2d.shape
    f = w1.shape[1]
    tm = _row_tile(n_rows)
    kern = functools.partial(_ln_ffn_res_kernel, compute_dtype=COMPUTE_DTYPE)
    return pl.pallas_call(
        kern,
        out_shape=jax.ShapeDtypeStruct((n_rows, d), jnp.float32),
        grid=(n_rows // tm,),
        in_specs=[pl.BlockSpec((tm, d), lambda i: (i, 0)),
                  pl.BlockSpec((1, d), lambda i: (0, 0)),
                  pl.BlockSpec((1, d), lambda i: (0, 0)),
                  pl.BlockSpec((d, f), lambda i: (0, 0)),
                  pl.BlockSpec((1, f), lambda i: (0, 0)),
                  pl.BlockSpec((f, d), lambda i: (0, 0)),
                  pl.BlockSpec((1, d), lambda i: (0, 0))],
        out_specs=pl.BlockSpec((tm, d), lambda i: (i, 0)),
        compiler_params=pltpu.CompilerParams(
            dimension_semantics=("parallel",)),
    )(x2d, a.reshape(1, d), b.reshape(1, d),
      w1.astype(COMPUTE_DTYPE), b1.reshape(1, f),
      w2.astype(COMPUTE_DTYPE), b2.reshape(1, d))


# --------------------------- DecoderLayer forward -----------------------------

def decoder_layer(x, memory, src_mask, tgt_mask, params, H):
    B, T, D = x.shape
    S = memory.shape[1]

    # ---- sublayer 0: masked self-attention (LN0 fused into QKV projection) ----
    sa = params["self_attn"]
    q, k, v = ln_proj_pallas(x.reshape(B * T, D),
                             params["ln0_a"], params["ln0_b"],
                             [sa["wq"], sa["wk"], sa["wv"]],
                             [sa["bq"], sa["bk"], sa["bv"]], has_ln=True)
    tgt_m = _prep_mask(tgt_mask, B, T, T)
    x = mha_oproj_res_pallas(q.reshape(B, T, D), k.reshape(B, T, D),
                             v.reshape(B, T, D), tgt_m, sa["wo"], sa["bo"], x, H)

    # ---- sublayer 1: cross-attention over encoder memory ----
    ca = params["src_attn"]
    mk, mv = ln_proj_pallas(memory.reshape(B * S, D), None, None,
                            [ca["wk"], ca["wv"]], [ca["bk"], ca["bv"]],
                            has_ln=False)
    (cq,) = ln_proj_pallas(x.reshape(B * T, D),
                           params["ln1_a"], params["ln1_b"],
                           [ca["wq"]], [ca["bq"]], has_ln=True)
    src_m = _prep_mask(src_mask, B, T, S)
    x = mha_oproj_res_pallas(cq.reshape(B, T, D), mk.reshape(B, S, D),
                             mv.reshape(B, S, D), src_m, ca["wo"], ca["bo"], x, H)

    # ---- sublayer 2: position-wise feed-forward (LN2 + FFN + residual fused) ----
    out = ln_ffn_res_pallas(x.reshape(B * T, D),
                            params["ln2_a"], params["ln2_b"],
                            params["ff_w1"], params["ff_b1"],
                            params["ff_w2"], params["ff_b2"])
    return out.reshape(B, T, D)


# --------------------------- Pure-JAX f32 reference ---------------------------

def _ref_decoder_layer(x, memory, src_mask, tgt_mask, params, H):
    B, T, D = x.shape
    dk = D // H

    def ln(y, a, b):
        mean = jnp.mean(y, axis=-1, keepdims=True)
        var = jnp.sum((y - mean) ** 2, axis=-1, keepdims=True) / (D - 1)
        return a * (y - mean) / (jnp.sqrt(var) + EPS) + b

    def mha(xq, xkv, mask, p):
        Tq, Tk = xq.shape[1], xkv.shape[1]
        q = (xq @ p["wq"] + p["bq"]).reshape(B, Tq, H, dk).transpose(0, 2, 1, 3)
        k = (xkv @ p["wk"] + p["bk"]).reshape(B, Tk, H, dk).transpose(0, 2, 1, 3)
        v = (xkv @ p["wv"] + p["bv"]).reshape(B, Tk, H, dk).transpose(0, 2, 1, 3)
        s = jnp.einsum("bhqd,bhkd->bhqk", q, k) / jnp.sqrt(float(dk))
        s = jnp.where(mask == 0, -1e9, s)
        p_att = jax.nn.softmax(s, axis=-1)
        o = jnp.einsum("bhqk,bhkd->bhqd", p_att, v)
        o = o.transpose(0, 2, 1, 3).reshape(B, Tq, D)
        return o @ p["wo"] + p["bo"]

    xn = ln(x, params["ln0_a"], params["ln0_b"])
    x = x + mha(xn, xn, tgt_mask, params["self_attn"])
    x = x + mha(ln(x, params["ln1_a"], params["ln1_b"]), memory, src_mask,
                params["src_attn"])
    xn = ln(x, params["ln2_a"], params["ln2_b"])
    h = jnp.maximum(xn @ params["ff_w1"] + params["ff_b1"], 0.0)
    return x + (h @ params["ff_w2"] + params["ff_b2"])


# --------------------------- Parameter init -----------------------------------

def init_params(key, D, d_ff):
    ks = jax.random.split(key, 4)

    def attn_params(k4):
        k = jax.random.split(k4, 4)
        return {
            "wq": jax.random.normal(k[0], (D, D), jnp.float32) * 0.05,
            "bq": jnp.zeros((D,), jnp.float32),
            "wk": jax.random.normal(k[1], (D, D), jnp.float32) * 0.05,
            "bk": jnp.zeros((D,), jnp.float32),
            "wv": jax.random.normal(k[2], (D, D), jnp.float32) * 0.05,
            "bv": jnp.zeros((D,), jnp.float32),
            "wo": jax.random.normal(k[3], (D, D), jnp.float32) * 0.05,
            "bo": jnp.zeros((D,), jnp.float32),
        }

    return {
        "ln0_a": jnp.ones((D,), jnp.float32), "ln0_b": jnp.zeros((D,), jnp.float32),
        "ln1_a": jnp.ones((D,), jnp.float32), "ln1_b": jnp.zeros((D,), jnp.float32),
        "ln2_a": jnp.ones((D,), jnp.float32), "ln2_b": jnp.zeros((D,), jnp.float32),
        "self_attn": attn_params(ks[0]),
        "src_attn": attn_params(ks[1]),
        "ff_w1": jax.random.normal(ks[2], (D, d_ff), jnp.float32) * 0.05,
        "ff_b1": jnp.zeros((d_ff,), jnp.float32),
        "ff_w2": jax.random.normal(ks[3], (d_ff, D), jnp.float32) * 0.05,
        "ff_b2": jnp.zeros((D,), jnp.float32),
    }


# --------------------------- Main ----------------------------------------------

if __name__ == "__main__":
    B, T, S, D, H, d_ff = 2, 8, 8, 32, 4, 64

    key = jax.random.PRNGKey(0)
    k_x, k_m, k_p = jax.random.split(key, 3)
    x = jax.random.normal(k_x, (B, T, D), jnp.float32)
    memory = jax.random.normal(k_m, (B, S, D), jnp.float32)
    params = init_params(k_p, D, d_ff)

    # tgt_mask: causal (1,1,T,T); src_mask: all-ones (1,1,1,S)
    tgt_mask = jnp.tril(jnp.ones((T, T), jnp.float32)).reshape(1, 1, T, T)
    src_mask = jnp.ones((1, 1, 1, S), jnp.float32)

    layer = jax.jit(decoder_layer, static_argnames=("H",))
    out = layer(x, memory, src_mask, tgt_mask, params, H=H)
    out = jax.block_until_ready(out)

    ref = _ref_decoder_layer(x, memory, src_mask, tgt_mask, params, H)
    assert out.shape == (B, T, D)
    # bf16 matmul operands (f32 accumulation, f32 LN/softmax) vs f32 reference:
    # loosened tolerance accounts for bf16 rounding only.
    assert jnp.allclose(out, ref, atol=3e-2, rtol=3e-2), "mismatch vs reference"

    print("KERNEL_OK")
</pallas_src>

<mosaic_0001>
module attributes {stable_mosaic.version = 11 : i64} {
  func.func @_proj_kernel(%arg0: i32, %arg1: memref<16x32xf32, #tpu.memory_space<vmem>>, %arg2: memref<1x32xf32, #tpu.memory_space<vmem>>, %arg3: memref<1x32xf32, #tpu.memory_space<vmem>>, %arg4: memref<32x32xbf16, #tpu.memory_space<vmem>>, %arg5: memref<1x32xf32, #tpu.memory_space<vmem>>, %arg6: memref<32x32xbf16, #tpu.memory_space<vmem>>, %arg7: memref<1x32xf32, #tpu.memory_space<vmem>>, %arg8: memref<32x32xbf16, #tpu.memory_space<vmem>>, %arg9: memref<1x32xf32, #tpu.memory_space<vmem>>, %arg10: memref<16x32xbf16, #tpu.memory_space<vmem>>, %arg11: memref<16x32xbf16, #tpu.memory_space<vmem>>, %arg12: memref<16x32xbf16, #tpu.memory_space<vmem>>) attributes {dimension_semantics = [#tpu.dimension_semantics<parallel>], iteration_bounds = array<i64: 1>, scalar_prefetch = 0 : i64, scratch_operands = 0 : i64, tpu.core_type = #tpu.core_type<tc>, window_params = [{transform_indices = @transform_0, window_bounds = array<i64: 16, 32>}, {pipeline_mode = #tpu.pipeline_mode<synchronous>, transform_indices = @transform_1, window_bounds = array<i64: 1, 32>}, {pipeline_mode = #tpu.pipeline_mode<synchronous>, transform_indices = @transform_2, window_bounds = array<i64: 1, 32>}, {pipeline_mode = #tpu.pipeline_mode<synchronous>, transform_indices = @transform_3, window_bounds = array<i64: 32, 32>}, {pipeline_mode = #tpu.pipeline_mode<synchronous>, transform_indices = @transform_4, window_bounds = array<i64: 1, 32>}, {pipeline_mode = #tpu.pipeline_mode<synchronous>, transform_indices = @transform_5, window_bounds = array<i64: 32, 32>}, {pipeline_mode = #tpu.pipeline_mode<synchronous>, transform_indices = @transform_6, window_bounds = array<i64: 1, 32>}, {pipeline_mode = #tpu.pipeline_mode<synchronous>, transform_indices = @transform_7, window_bounds = array<i64: 32, 32>}, {pipeline_mode = #tpu.pipeline_mode<synchronous>, transform_indices = @transform_8, window_bounds = array<i64: 1, 32>}, {transform_indices = @transform_9, window_bounds = array<i64: 16, 32>}, {transform_indices = @transform_10, window_bounds = array<i64: 16, 32>}, {transform_indices = @transform_11, window_bounds = array<i64: 16, 32>}]} {
    %c0 = arith.constant 0 : index
    %c0_0 = arith.constant 0 : index
    %0 = vector.load %arg1[%c0, %c0_0] : memref<16x32xf32, #tpu.memory_space<vmem>>, vector<16x32xf32>
    %cst = arith.constant dense<0.000000e+00> : vector<16xf32>
    %1 = vector.multi_reduction <add>, %0, %cst [1] : vector<16x32xf32> to vector<16xf32>
    %2 = vector.shape_cast %1 : vector<16xf32> to vector<16x1xf32>
    %cst_1 = arith.constant 3.200000e+01 : f32
    %3 = vector.broadcast %cst_1 : f32 to vector<16x1xf32>
    %4 = arith.divf %2, %3 : vector<16x1xf32>
    %5 = vector.broadcast %4 : vector<16x1xf32> to vector<16x32xf32>
    %6 = arith.subf %0, %5 : vector<16x32xf32>
    %7 = arith.mulf %6, %6 : vector<16x32xf32>
    %cst_2 = arith.constant dense<0.000000e+00> : vector<16xf32>
    %8 = vector.multi_reduction <add>, %7, %cst_2 [1] : vector<16x32xf32> to vector<16xf32>
    %9 = vector.shape_cast %8 : vector<16xf32> to vector<16x1xf32>
    %cst_3 = arith.constant 3.100000e+01 : f32
    %10 = vector.broadcast %cst_3 : f32 to vector<16x1xf32>
    %11 = arith.divf %9, %10 : vector<16x1xf32>
    %12 = math.sqrt %11 : vector<16x1xf32>
    %cst_4 = arith.constant 9.99999997E-7 : f32
    %13 = vector.broadcast %cst_4 : f32 to vector<16x1xf32>
    %14 = arith.addf %12, %13 : vector<16x1xf32>
    %15 = tpu.reciprocal %14 : vector<16x1xf32> -> vector<16x1xf32>
    %c0_5 = arith.constant 0 : index
    %c0_6 = arith.constant 0 : index
    %16 = vector.load %arg2[%c0_5, %c0_6] : memref<1x32xf32, #tpu.memory_space<vmem>>, vector<1x32xf32>
    %17 = vector.broadcast %4 : vector<16x1xf32> to vector<16x32xf32>
    %18 = arith.subf %0, %17 : vector<16x32xf32>
    %19 = vector.broadcast %16 : vector<1x32xf32> to vector<16x32xf32>
    %20 = arith.mulf %19, %18 : vector<16x32xf32>
    %21 = vector.broadcast %15 : vector<16x1xf32> to vector<16x32xf32>
    %22 = arith.mulf %20, %21 : vector<16x32xf32>
    %c0_7 = arith.constant 0 : index
    %c0_8 = arith.constant 0 : index
    %23 = vector.load %arg3[%c0_7, %c0_8] : memref<1x32xf32, #tpu.memory_space<vmem>>, vector<1x32xf32>
    %24 = vector.broadcast %23 : vector<1x32xf32> to vector<16x32xf32>
    %25 = arith.addf %22, %24 : vector<16x32xf32>
    %26 = arith.truncf %25 : vector<16x32xf32> to vector<16x32xbf16>
    %c0_9 = arith.constant 0 : index
    %c0_10 = arith.constant 0 : index
    %27 = vector.load %arg4[%c0_9, %c0_10] : memref<32x32xbf16, #tpu.memory_space<vmem>>, vector<32x32xbf16>
    %c0_11 = arith.constant 0 : index
    %c0_12 = arith.constant 0 : index
    %28 = vector.load %arg5[%c0_11, %c0_12] : memref<1x32xf32, #tpu.memory_space<vmem>>, vector<1x32xf32>
    %cst_13 = arith.constant dense<0.000000e+00> : vector<16x32xf32>
    %29 = tpu.matmul %26, %27, %cst_13 {dimension_numbers = #tpu.dot_dimension_numbers<[1], [0], [0], [1], [0, 0, 1, 1], [], []>} : vector<16x32xbf16>, vector<32x32xbf16>, vector<16x32xf32> -> vector<16x32xf32>
    %30 = vector.broadcast %28 : vector<1x32xf32> to vector<16x32xf32>
    %31 = arith.addf %29, %30 : vector<16x32xf32>
    %32 = arith.truncf %31 : vector<16x32xf32> to vector<16x32xbf16>
    %c0_14 = arith.constant 0 : index
    %c0_15 = arith.constant 0 : index
    %33 = vector.load %arg10[%c0_14, %c0_15] : memref<16x32xbf16, #tpu.memory_space<vmem>>, vector<16x32xbf16>
    tpu.vector_store %arg10[%c0_14, %c0_15], %32 {strides = array<i32>} : memref<16x32xbf16, #tpu.memory_space<vmem>>, vector<16x32xbf16>,
    %c0_16 = arith.constant 0 : index
    %c0_17 = arith.constant 0 : index
    %34 = vector.load %arg6[%c0_16, %c0_17] : memref<32x32xbf16, #tpu.memory_space<vmem>>, vector<32x32xbf16>
    %c0_18 = arith.constant 0 : index
    %c0_19 = arith.constant 0 : index
    %35 = vector.load %arg7[%c0_18, %c0_19] : memref<1x32xf32, #tpu.memory_space<vmem>>, vector<1x32xf32>
    %cst_20 = arith.constant dense<0.000000e+00> : vector<16x32xf32>
    %36 = tpu.matmul %26, %34, %cst_20 {dimension_numbers = #tpu.dot_dimension_numbers<[1], [0], [0], [1], [0, 0, 1, 1], [], []>} : vector<16x32xbf16>, vector<32x32xbf16>, vector<16x32xf32> -> vector<16x32xf32>
    %37 = vector.broadcast %35 : vector<1x32xf32> to vector<16x32xf32>
    %38 = arith.addf %36, %37 : vector<16x32xf32>
    %39 = arith.truncf %38 : vector<16x32xf32> to vector<16x32xbf16>
    %c0_21 = arith.constant 0 : index
    %c0_22 = arith.constant 0 : index
    %40 = vector.load %arg11[%c0_21, %c0_22] : memref<16x32xbf16, #tpu.memory_space<vmem>>, vector<16x32xbf16>
    tpu.vector_store %arg11[%c0_21, %c0_22], %39 {strides = array<i32>} : memref<16x32xbf16, #tpu.memory_space<vmem>>, vector<16x32xbf16>,
    %c0_23 = arith.constant 0 : index
    %c0_24 = arith.constant 0 : index
    %41 = vector.load %arg8[%c0_23, %c0_24] : memref<32x32xbf16, #tpu.memory_space<vmem>>, vector<32x32xbf16>
    %c0_25 = arith.constant 0 : index
    %c0_26 = arith.constant 0 : index
    %42 = vector.load %arg9[%c0_25, %c0_26] : memref<1x32xf32, #tpu.memory_space<vmem>>, vector<1x32xf32>
    %cst_27 = arith.constant dense<0.000000e+00> : vector<16x32xf32>
    %43 = tpu.matmul %26, %41, %cst_27 {dimension_numbers = #tpu.dot_dimension_numbers<[1], [0], [0], [1], [0, 0, 1, 1], [], []>} : vector<16x32xbf16>, vector<32x32xbf16>, vector<16x32xf32> -> vector<16x32xf32>
    %44 = vector.broadcast %42 : vector<1x32xf32> to vector<16x32xf32>
    %45 = arith.addf %43, %44 : vector<16x32xf32>
    %46 = arith.truncf %45 : vector<16x32xf32> to vector<16x32xbf16>
    %c0_28 = arith.constant 0 : index
    %c0_29 = arith.constant 0 : index
    %47 = vector.load %arg12[%c0_28, %c0_29] : memref<16x32xbf16, #tpu.memory_space<vmem>>, vector<16x32xbf16>
    tpu.vector_store %arg12[%c0_28, %c0_29], %46 {strides = array<i32>} : memref<16x32xbf16, #tpu.memory_space<vmem>>, vector<16x32xbf16>,
    return
  }
  func.func @transform_0(%arg0: i32) -> (i32, i32) {
    %c0_i32 = arith.constant 0 : i32
    %c0_i32_0 = arith.constant 0 : i32
    return %arg0, %c0_i32 : i32, i32
  }
  func.func @transform_1(%arg0: i32) -> (i32, i32) {
    %c0_i32 = arith.constant 0 : i32
    %c0_i32_0 = arith.constant 0 : i32
    %c0_i32_1 = arith.constant 0 : i32
    return %c0_i32, %c0_i32_0 : i32, i32
  }
  func.func @transform_2(%arg0: i32) -> (i32, i32) {
    %c0_i32 = arith.constant 0 : i32
    %c0_i32_0 = arith.constant 0 : i32
    %c0_i32_1 = arith.constant 0 : i32
    return %c0_i32, %c0_i32_0 : i32, i32
  }
  func.func @transform_3(%arg0: i32) -> (i32, i32) {
    %c0_i32 = arith.constant 0 : i32
    %c0_i32_0 = arith.constant 0 : i32
    %c0_i32_1 = arith.constant 0 : i32
    return %c0_i32, %c0_i32_0 : i32, i32
  }
  func.func @transform_4(%arg0: i32) -> (i32, i32) {
    %c0_i32 = arith.constant 0 : i32
    %c0_i32_0 = arith.constant 0 : i32
    %c0_i32_1 = arith.constant 0 : i32
    return %c0_i32, %c0_i32_0 : i32, i32
  }
  func.func @transform_5(%arg0: i32) -> (i32, i32) {
    %c0_i32 = arith.constant 0 : i32
    %c0_i32_0 = arith.constant 0 : i32
    %c0_i32_1 = arith.constant 0 : i32
    return %c0_i32, %c0_i32_0 : i32, i32
  }
  func.func @transform_6(%arg0: i32) -> (i32, i32) {
    %c0_i32 = arith.constant 0 : i32
    %c0_i32_0 = arith.constant 0 : i32
    %c0_i32_1 = arith.constant 0 : i32
    return %c0_i32, %c0_i32_0 : i32, i32
  }
  func.func @transform_7(%arg0: i32) -> (i32, i32) {
    %c0_i32 = arith.constant 0 : i32
    %c0_i32_0 = arith.constant 0 : i32
    %c0_i32_1 = arith.constant 0 : i32
    return %c0_i32, %c0_i32_0 : i32, i32
  }
  func.func @transform_8(%arg0: i32) -> (i32, i32) {
    %c0_i32 = arith.constant 0 : i32
    %c0_i32_0 = arith.constant 0 : i32
    %c0_i32_1 = arith.constant 0 : i32
    return %c0_i32, %c0_i32_0 : i32, i32
  }
  func.func @transform_9(%arg0: i32) -> (i32, i32) {
    %c0_i32 = arith.constant 0 : i32
    %c0_i32_0 = arith.constant 0 : i32
    return %arg0, %c0_i32 : i32, i32
  }
  func.func @transform_10(%arg0: i32) -> (i32, i32) {
    %c0_i32 = arith.constant 0 : i32
    %c0_i32_0 = arith.constant 0 : i32
    return %arg0, %c0_i32 : i32, i32
  }
  func.func @transform_11(%arg0: i32) -> (i32, i32) {
    %c0_i32 = arith.constant 0 : i32
    %c0_i32_0 = arith.constant 0 : i32
    return %arg0, %c0_i32 : i32, i32
  }
}

module attributes {stable_mosaic.version = 11 : i64} {
  func.func @_mha_oproj_res_kernel(%arg0: i32, %arg1: memref<1x8x32xbf16, #tpu.memory_space<vmem>>, %arg2: memref<1x8x32xbf16, #tpu.memory_space<vmem>>, %arg3: memref<1x8x32xbf16, #tpu.memory_space<vmem>>, %arg4: memref<1x8x8xi32, #tpu.memory_space<vmem>>, %arg5: memref<32x32xbf16, #tpu.memory_space<vmem>>, %arg6: memref<1x32xf32, #tpu.memory_space<vmem>>, %arg7: memref<1x8x32xf32, #tpu.memory_space<vmem>>, %arg8: memref<1x8x32xf32, #tpu.memory_space<vmem>>) attributes {dimension_semantics = [#tpu.dimension_semantics<parallel>], iteration_bounds = array<i64: 2>, scalar_prefetch = 0 : i64, scratch_operands = 0 : i64, tpu.core_type = #tpu.core_type<tc>, window_params = [{transform_indices = @transform_0, window_bounds = array<i64: 1, 8, 32>}, {transform_indices = @transform_1, window_bounds = array<i64: 1, 8, 32>}, {transform_indices = @transform_2, window_bounds = array<i64: 1, 8, 32>}, {pipeline_mode = #tpu.pipeline_mode<synchronous>, transform_indices = @transform_3, window_bounds = array<i64: 1, 8, 8>}, {pipeline_mode = #tpu.pipeline_mode<synchronous>, transform_indices = @transform_4, window_bounds = array<i64: 32, 32>}, {pipeline_mode = #tpu.pipeline_mode<synchronous>, transform_indices = @transform_5, window_bounds = array<i64: 1, 32>}, {transform_indices = @transform_6, window_bounds = array<i64: 1, 8, 32>}, {transform_indices = @transform_7, window_bounds = array<i64: 1, 8, 32>}]} {
    %c0 = arith.constant 0 : index
    %c0_0 = arith.constant 0 : index
    %c0_1 = arith.constant 0 : index
    %0 = vector.load %arg1[%c0, %c0_0, %c0_1] : memref<1x8x32xbf16, #tpu.memory_space<vmem>>, vector<1x8x32xbf16>
    %1 = vector.shape_cast %0 : vector<1x8x32xbf16> to vector<8x32xbf16>
    %c0_2 = arith.constant 0 : index
    %c0_3 = arith.constant 0 : index
    %c0_4 = arith.constant 0 : index
    %2 = vector.load %arg2[%c0_2, %c0_3, %c0_4] : memref<1x8x32xbf16, #tpu.memory_space<vmem>>, vector<1x8x32xbf16>
    %3 = vector.shape_cast %2 : vector<1x8x32xbf16> to vector<8x32xbf16>
    %c0_5 = arith.constant 0 : index
    %c0_6 = arith.constant 0 : index
    %c0_7 = arith.constant 0 : index
    %4 = vector.load %arg3[%c0_5, %c0_6, %c0_7] : memref<1x8x32xbf16, #tpu.memory_space<vmem>>, vector<1x8x32xbf16>
    %5 = vector.shape_cast %4 : vector<1x8x32xbf16> to vector<8x32xbf16>
    %c0_8 = arith.constant 0 : index
    %c0_9 = arith.constant 0 : index
    %c0_10 = arith.constant 0 : index
    %6 = vector.load %arg4[%c0_8, %c0_9, %c0_10] : memref<1x8x8xi32, #tpu.memory_space<vmem>>, vector<1x8x8xi32>
    %7 = vector.shape_cast %6 : vector<1x8x8xi32> to vector<8x8xi32>
    %c0_11 = arith.constant 0 : index
    %c0_12 = arith.constant 0 : index
    %8 = vector.load %arg5[%c0_11, %c0_12] : memref<32x32xbf16, #tpu.memory_space<vmem>>, vector<32x32xbf16>
    %c0_13 = arith.constant 0 : index
    %c0_14 = arith.constant 0 : index
    %c0_15 = arith.constant 0 : index
    %9 = vector.load %arg7[%c0_13, %c0_14, %c0_15] : memref<1x8x32xf32, #tpu.memory_space<vmem>>, vector<1x8x32xf32>
    %10 = vector.shape_cast %9 : vector<1x8x32xf32> to vector<8x32xf32>
    %c0_16 = arith.constant 0 : index
    %c0_17 = arith.constant 0 : index
    %11 = vector.load %arg6[%c0_16, %c0_17] : memref<1x32xf32, #tpu.memory_space<vmem>>, vector<1x32xf32>
    %12 = vector.broadcast %11 : vector<1x32xf32> to vector<8x32xf32>
    %13 = arith.addf %10, %12 : vector<8x32xf32>
    %14 = vector.extract_strided_slice %1 {offsets = [0, 0], sizes = [8, 8], strides = [1, 1]} : vector<8x32xbf16> to vector<8x8xbf16>
    %15 = vector.extract_strided_slice %3 {offsets = [0, 0], sizes = [8, 8], strides = [1, 1]} : vector<8x32xbf16> to vector<8x8xbf16>
    %16 = vector.extract_strided_slice %5 {offsets = [0, 0], sizes = [8, 8], strides = [1, 1]} : vector<8x32xbf16> to vector<8x8xbf16>
    %cst = arith.constant dense<0.000000e+00> : vector<8x8xf32>
    %17 = tpu.matmul %14, %15, %cst {dimension_numbers = #tpu.dot_dimension_numbers<[1], [1], [0], [0], [0, 0, 1, 0], [], []>} : vector<8x8xbf16>, vector<8x8xbf16>, vector<8x8xf32> -> vector<8x8xf32>
    %cst_18 = arith.constant 0.353553385 : f32
    %18 = vector.broadcast %cst_18 : f32 to vector<8x8xf32>
    %19 = arith.mulf %17, %18 : vector<8x8xf32>
    %c0_i32 = arith.constant 0 : i32
    %20 = vector.broadcast %c0_i32 : i32 to vector<8x8xi32>
    %21 = arith.cmpi eq, %7, %20 : vector<8x8xi32>
    %cst_19 = arith.constant -1.000000e+09 : f32
    %22 = vector.broadcast %cst_19 : f32 to vector<8x8xf32>
    %23 = arith.select %21, %22, %19 : vector<8x8xi1>, vector<8x8xf32>
    %cst_20 = arith.constant dense<0xFF800000> : vector<8xf32>
    %24 = vector.multi_reduction <maximumf>, %23, %cst_20 [1] : vector<8x8xf32> to vector<8xf32>
    %25 = vector.shape_cast %24 : vector<8xf32> to vector<8x1xf32>
    %26 = vector.broadcast %25 : vector<8x1xf32> to vector<8x8xf32>
    %27 = arith.subf %23, %26 : vector<8x8xf32>
    %28 = math.exp %27 : vector<8x8xf32>
    %cst_21 = arith.constant dense<0.000000e+00> : vector<8xf32>
    %29 = vector.multi_reduction <add>, %28, %cst_21 [1] : vector<8x8xf32> to vector<8xf32>
    %30 = vector.shape_cast %29 : vector<8xf32> to vector<8x1xf32>
    %31 = tpu.reciprocal %30 {approx = true} : vector<8x1xf32> -> vector<8x1xf32>
    %32 = vector.broadcast %31 : vector<8x1xf32> to vector<8x8xf32>
    %33 = arith.mulf %28, %32 : vector<8x8xf32>
    %34 = arith.truncf %33 : vector<8x8xf32> to vector<8x8xbf16>
    %cst_22 = arith.constant dense<0.000000e+00> : vector<8x8xf32>
    %35 = tpu.matmul %34, %16, %cst_22 {dimension_numbers = #tpu.dot_dimension_numbers<[1], [0], [0], [1], [0, 0, 1, 1], [], []>} : vector<8x8xbf16>, vector<8x8xbf16>, vector<8x8xf32> -> vector<8x8xf32>
    %36 = arith.truncf %35 : vector<8x8xf32> to vector<8x8xbf16>
    %37 = vector.extract_strided_slice %8 {offsets = [0, 0], sizes = [8, 32], strides = [1, 1]} : vector<32x32xbf16> to vector<8x32xbf16>
    %cst_23 = arith.constant dense<0.000000e+00> : vector<8x32xf32>
    %38 = tpu.matmul %36, %37, %cst_23 {dimension_numbers = #tpu.dot_dimension_numbers<[1], [0], [0], [1], [0, 0, 1, 1], [], []>} : vector<8x8xbf16>, vector<8x32xbf16>, vector<8x32xf32> -> vector<8x32xf32>
    %39 = arith.addf %13, %38 : vector<8x32xf32>
    %40 = vector.extract_strided_slice %1 {offsets = [0, 8], sizes = [8, 8], strides = [1, 1]} : vector<8x32xbf16> to vector<8x8xbf16>
    %41 = vector.extract_strided_slice %3 {offsets = [0, 8], sizes = [8, 8], strides = [1, 1]} : vector<8x32xbf16> to vector<8x8xbf16>
    %42 = vector.extract_strided_slice %5 {offsets = [0, 8], sizes = [8, 8], strides = [1, 1]} : vector<8x32xbf16> to vector<8x8xbf16>
    %cst_24 = arith.constant dense<0.000000e+00> : vector<8x8xf32>
    %43 = tpu.matmul %40, %41, %cst_24 {dimension_numbers = #tpu.dot_dimension_numbers<[1], [1], [0], [0], [0, 0, 1, 0], [], []>} : vector<8x8xbf16>, vector<8x8xbf16>, vector<8x8xf32> -> vector<8x8xf32>
    %cst_25 = arith.constant 0.353553385 : f32
    %44 = vector.broadcast %cst_25 : f32 to vector<8x8xf32>
    %45 = arith.mulf %43, %44 : vector<8x8xf32>
    %c0_i32_26 = arith.constant 0 : i32
    %46 = vector.broadcast %c0_i32_26 : i32 to vector<8x8xi32>
    %47 = arith.cmpi eq, %7, %46 : vector<8x8xi32>
    %cst_27 = arith.constant -1.000000e+09 : f32
    %48 = vector.broadcast %cst_27 : f32 to vector<8x8xf32>
    %49 = arith.select %47, %48, %45 : vector<8x8xi1>, vector<8x8xf32>
    %cst_28 = arith.constant dense<0xFF800000> : vector<8xf32>
    %50 = vector.multi_reduction <maximumf>, %49, %cst_28 [1] : vector<8x8xf32> to vector<8xf32>
    %51 = vector.shape_cast %50 : vector<8xf32> to vector<8x1xf32>
    %52 = vector.broadcast %51 : vector<8x1xf32> to vector<8x8xf32>
    %53 = arith.subf %49, %52 : vector<8x8xf32>
    %54 = math.exp %53 : vector<8x8xf32>
    %cst_29 = arith.constant dense<0.000000e+00> : vector<8xf32>
    %55 = vector.multi_reduction <add>, %54, %cst_29 [1] : vector<8x8xf32> to vector<8xf32>
    %56 = vector.shape_cast %55 : vector<8xf32> to vector<8x1xf32>
    %57 = tpu.reciprocal %56 {approx = true} : vector<8x1xf32> -> vector<8x1xf32>
    %58 = vector.broadcast %57 : vector<8x1xf32> to vector<8x8xf32>
    %59 = arith.mulf %54, %58 : vector<8x8xf32>
    %60 = arith.truncf %59 : vector<8x8xf32> to vector<8x8xbf16>
    %cst_30 = arith.constant dense<0.000000e+00> : vector<8x8xf32>
    %61 = tpu.matmul %60, %42, %cst_30 {dimension_numbers = #tpu.dot_dimension_numbers<[1], [0], [0], [1], [0, 0, 1, 1], [], []>} : vector<8x8xbf16>, vector<8x8xbf16>, vector<8x8xf32> -> vector<8x8xf32>
    %62 = arith.truncf %61 : vector<8x8xf32> to vector<8x8xbf16>
    %63 = vector.extract_strided_slice %8 {offsets = [8, 0], sizes = [8, 32], strides = [1, 1]} : vector<32x32xbf16> to vector<8x32xbf16>
    %cst_31 = arith.constant dense<0.000000e+00> : vector<8x32xf32>
    %64 = tpu.matmul %62, %63, %cst_31 {dimension_numbers = #tpu.dot_dimension_numbers<[1], [0], [0], [1], [0, 0, 1, 1], [], []>} : vector<8x8xbf16>, vector<8x32xbf16>, vector<8x32xf32> -> vector<8x32xf32>
    %65 = arith.addf %39, %64 : vector<8x32xf32>
    %66 = vector.extract_strided_slice %1 {offsets = [0, 16], sizes = [8, 8], strides = [1, 1]} : vector<8x32xbf16> to vector<8x8xbf16>
    %67 = vector.extract_strided_slice %3 {offsets = [0, 16], sizes = [8, 8], strides = [1, 1]} : vector<8x32xbf16> to vector<8x8xbf16>
    %68 = vector.extract_strided_slice %5 {offsets = [0, 16], sizes = [8, 8], strides = [1, 1]} : vector<8x32xbf16> to vector<8x8xbf16>
    %cst_32 = arith.constant dense<0.000000e+00> : vector<8x8xf32>
    %69 = tpu.matmul %66, %67, %cst_32 {dimension_numbers = #tpu.dot_dimension_numbers<[1], [1], [0], [0], [0, 0, 1, 0], [], []>} : vector<8x8xbf16>, vector<8x8xbf16>, vector<8x8xf32> -> vector<8x8xf32>
    %cst_33 = arith.constant 0.353553385 : f32
    %70 = vector.broadcast %cst_33 : f32 to vector<8x8xf32>
    %71 = arith.mulf %69, %70 : vector<8x8xf32>
    %c0_i32_34 = arith.constant 0 : i32
    %72 = vector.broadcast %c0_i32_34 : i32 to vector<8x8xi32>
    %73 = arith.cmpi eq, %7, %72 : vector<8x8xi32>
    %cst_35 = arith.constant -1.000000e+09 : f32
    %74 = vector.broadcast %cst_35 : f32 to vector<8x8xf32>
    %75 = arith.select %73, %74, %71 : vector<8x8xi1>, vector<8x8xf32>
    %cst_36 = arith.constant dense<0xFF800000> : vector<8xf32>
    %76 = vector.multi_reduction <maximumf>, %75, %cst_36 [1] : vector<8x8xf32> to vector<8xf32>
    %77 = vector.shape_cast %76 : vector<8xf32> to vector<8x1xf32>
    %78 = vector.broadcast %77 : vector<8x1xf32> to vector<8x8xf32>
    %79 = arith.subf %75, %78 : vector<8x8xf32>
    %80 = math.exp %79 : vector<8x8xf32>
    %cst_37 = arith.constant dense<0.000000e+00> : vector<8xf32>
    %81 = vector.multi_reduction <add>, %80, %cst_37 [1] : vector<8x8xf32> to vector<8xf32>
    %82 = vector.shape_cast %81 : vector<8xf32> to vector<8x1xf32>
    %83 = tpu.reciprocal %82 {approx = true} : vector<8x1xf32> -> vector<8x1xf32>
    %84 = vector.broadcast %83 : vector<8x1xf32> to vector<8x8xf32>
    %85 = arith.mulf %80, %84 : vector<8x8xf32>
    %86 = arith.truncf %85 : vector<8x8xf32> to vector<8x8xbf16>
    %cst_38 = arith.constant dense<0.000000e+00> : vector<8x8xf32>
    %87 = tpu.matmul %86, %68, %cst_38 {dimension_numbers = #tpu.dot_dimension_numbers<[1], [0], [0], [1], [0, 0, 1, 1], [], []>} : vector<8x8xbf16>, vector<8x8xbf16>, vector<8x8xf32> -> vector<8x8xf32>
    %88 = arith.truncf %87 : vector<8x8xf32> to vector<8x8xbf16>
    %89 = vector.extract_strided_slice %8 {offsets = [16, 0], sizes = [8, 32], strides = [1, 1]} : vector<32x32xbf16> to vector<8x32xbf16>
    %cst_39 = arith.constant dense<0.000000e+00> : vector<8x32xf32>
    %90 = tpu.matmul %88, %89, %cst_39 {dimension_numbers = #tpu.dot_dimension_numbers<[1], [0], [0], [1], [0, 0, 1, 1], [], []>} : vector<8x8xbf16>, vector<8x32xbf16>, vector<8x32xf32> -> vector<8x32xf32>
    %91 = arith.addf %65, %90 : vector<8x32xf32>
    %92 = vector.extract_strided_slice %1 {offsets = [0, 24], sizes = [8, 8], strides = [1, 1]} : vector<8x32xbf16> to vector<8x8xbf16>
    %93 = vector.extract_strided_slice %3 {offsets = [0, 24], sizes = [8, 8], strides = [1, 1]} : vector<8x32xbf16> to vector<8x8xbf16>
    %94 = vector.extract_strided_slice %5 {offsets = [0, 24], sizes = [8, 8], strides = [1, 1]} : vector<8x32xbf16> to vector<8x8xbf16>
    %cst_40 = arith.constant dense<0.000000e+00> : vector<8x8xf32>
    %95 = tpu.matmul %92, %93, %cst_40 {dimension_numbers = #tpu.dot_dimension_numbers<[1], [1], [0], [0], [0, 0, 1, 0], [], []>} : vector<8x8xbf16>, vector<8x8xbf16>, vector<8x8xf32> -> vector<8x8xf32>
    %cst_41 = arith.constant 0.353553385 : f32
    %96 = vector.broadcast %cst_41 : f32 to vector<8x8xf32>
    %97 = arith.mulf %95, %96 : vector<8x8xf32>
    %c0_i32_42 = arith.constant 0 : i32
    %98 = vector.broadcast %c0_i32_42 : i32 to vector<8x8xi32>
    %99 = arith.cmpi eq, %7, %98 : vector<8x8xi32>
    %cst_43 = arith.constant -1.000000e+09 : f32
    %100 = vector.broadcast %cst_43 : f32 to vector<8x8xf32>
    %101 = arith.select %99, %100, %97 : vector<8x8xi1>, vector<8x8xf32>
    %cst_44 = arith.constant dense<0xFF800000> : vector<8xf32>
    %102 = vector.multi_reduction <maximumf>, %101, %cst_44 [1] : vector<8x8xf32> to vector<8xf32>
    %103 = vector.shape_cast %102 : vector<8xf32> to vector<8x1xf32>
    %104 = vector.broadcast %103 : vector<8x1xf32> to vector<8x8xf32>
    %105 = arith.subf %101, %104 : vector<8x8xf32>
    %106 = math.exp %105 : vector<8x8xf32>
    %cst_45 = arith.constant dense<0.000000e+00> : vector<8xf32>
    %107 = vector.multi_reduction <add>, %106, %cst_45 [1] : vector<8x8xf32> to vector<8xf32>
    %108 = vector.shape_cast %107 : vector<8xf32> to vector<8x1xf32>
    %109 = tpu.reciprocal %108 {approx = true} : vector<8x1xf32> -> vector<8x1xf32>
    %110 = vector.broadcast %109 : vector<8x1xf32> to vector<8x8xf32>
    %111 = arith.mulf %106, %110 : vector<8x8xf32>
    %112 = arith.truncf %111 : vector<8x8xf32> to vector<8x8xbf16>
    %cst_46 = arith.constant dense<0.000000e+00> : vector<8x8xf32>
    %113 = tpu.matmul %112, %94, %cst_46 {dimension_numbers = #tpu.dot_dimension_numbers<[1], [0], [0], [1], [0, 0, 1, 1], [], []>} : vector<8x8xbf16>, vector<8x8xbf16>, vector<8x8xf32> -> vector<8x8xf32>
    %114 = arith.truncf %113 : vector<8x8xf32> to vector<8x8xbf16>
    %115 = vector.extract_strided_slice %8 {offsets = [24, 0], sizes = [8, 32], strides = [1, 1]} : vector<32x32xbf16> to vector<8x32xbf16>
    %cst_47 = arith.constant dense<0.000000e+00> : vector<8x32xf32>
    %116 = tpu.matmul %114, %115, %cst_47 {dimension_numbers = #tpu.dot_dimension_numbers<[1], [0], [0], [1], [0, 0, 1, 1], [], []>} : vector<8x8xbf16>, vector<8x32xbf16>, vector<8x32xf32> -> vector<8x32xf32>
    %117 = arith.addf %91, %116 : vector<8x32xf32>
    %c0_48 = arith.constant 0 : index
    %c0_49 = arith.constant 0 : index
    %c0_50 = arith.constant 0 : index
    %118 = vector.load %arg8[%c0_48, %c0_49, %c0_50] : memref<1x8x32xf32, #tpu.memory_space<vmem>>, vector<1x8x32xf32>
    %119 = vector.shape_cast %118 : vector<1x8x32xf32> to vector<8x32xf32>
    %120 = vector.shape_cast %117 : vector<8x32xf32> to vector<1x8x32xf32>
    tpu.vector_store %arg8[%c0_48, %c0_49, %c0_50], %120 {strides = array<i32>} : memref<1x8x32xf32, #tpu.memory_space<vmem>>, vector<1x8x32xf32>,
    return
  }
  func.func @transform_0(%arg0: i32) -> (i32, i32, i32) {
    %c0_i32 = arith.constant 0 : i32
    %c0_i32_0 = arith.constant 0 : i32
    %c0_i32_1 = arith.constant 0 : i32
    return %arg0, %c0_i32, %c0_i32_0 : i32, i32, i32
  }
  func.func @transform_1(%arg0: i32) -> (i32, i32, i32) {
    %c0_i32 = arith.constant 0 : i32
    %c0_i32_0 = arith.constant 0 : i32
    %c0_i32_1 = arith.constant 0 : i32
    return %arg0, %c0_i32, %c0_i32_0 : i32, i32, i32
  }
  func.func @transform_2(%arg0: i32) -> (i32, i32, i32) {
    %c0_i32 = arith.constant 0 : i32
    %c0_i32_0 = arith.constant 0 : i32
    %c0_i32_1 = arith.constant 0 : i32
    return %arg0, %c0_i32, %c0_i32_0 : i32, i32, i32
  }
  func.func @transform_3(%arg0: i32) -> (i32, i32, i32) {
    %c0_i32 = arith.constant 0 : i32
    %c0_i32_0 = arith.constant 0 : i32
    %c0_i32_1 = arith.constant 0 : i32
    %c0_i32_2 = arith.constant 0 : i32
    return %c0_i32, %c0_i32_0, %c0_i32_1 : i32, i32, i32
  }
  func.func @transform_4(%arg0: i32) -> (i32, i32) {
    %c0_i32 = arith.constant 0 : i32
    %c0_i32_0 = arith.constant 0 : i32
    %c0_i32_1 = arith.constant 0 : i32
    return %c0_i32, %c0_i32_0 : i32, i32
  }
  func.func @transform_5(%arg0: i32) -> (i32, i32) {
    %c0_i32 = arith.constant 0 : i32
    %c0_i32_0 = arith.constant 0 : i32
    %c0_i32_1 = arith.constant 0 : i32
    return %c0_i32, %c0_i32_0 : i32, i32
  }
  func.func @transform_6(%arg0: i32) -> (i32, i32, i32) {
    %c0_i32 = arith.constant 0 : i32
    %c0_i32_0 = arith.constant 0 : i32
    %c0_i32_1 = arith.constant 0 : i32
    return %arg0, %c0_i32, %c0_i32_0 : i32, i32, i32
  }
  func.func @transform_7(%arg0: i32) -> (i32, i32, i32) {
    %c0_i32 = arith.constant 0 : i32
    %c0_i32_0 = arith.constant 0 : i32
    %c0_i32_1 = arith.constant 0 : i32
    return %arg0, %c0_i32, %c0_i32_0 : i32, i32, i32
  }
}

module attributes {stable_mosaic.version = 11 : i64} {
  func.func @_proj_kernel(%arg0: i32, %arg1: memref<16x32xf32, #tpu.memory_space<vmem>>, %arg2: memref<1x32xf32, #tpu.memory_space<vmem>>, %arg3: memref<1x32xf32, #tpu.memory_space<vmem>>, %arg4: memref<32x32xbf16, #tpu.memory_space<vmem>>, %arg5: memref<1x32xf32, #tpu.memory_space<vmem>>, %arg6: memref<16x32xbf16, #tpu.memory_space<vmem>>) attributes {dimension_semantics = [#tpu.dimension_semantics<parallel>], iteration_bounds = array<i64: 1>, scalar_prefetch = 0 : i64, scratch_operands = 0 : i64, tpu.core_type = #tpu.core_type<tc>, window_params = [{transform_indices = @transform_0, window_bounds = array<i64: 16, 32>}, {pipeline_mode = #tpu.pipeline_mode<synchronous>, transform_indices = @transform_1, window_bounds = array<i64: 1, 32>}, {pipeline_mode = #tpu.pipeline_mode<synchronous>, transform_indices = @transform_2, window_bounds = array<i64: 1, 32>}, {pipeline_mode = #tpu.pipeline_mode<synchronous>, transform_indices = @transform_3, window_bounds = array<i64: 32, 32>}, {pipeline_mode = #tpu.pipeline_mode<synchronous>, transform_indices = @transform_4, window_bounds = array<i64: 1, 32>}, {transform_indices = @transform_5, window_bounds = array<i64: 16, 32>}]} {
    %c0 = arith.constant 0 : index
    %c0_0 = arith.constant 0 : index
    %0 = vector.load %arg1[%c0, %c0_0] : memref<16x32xf32, #tpu.memory_space<vmem>>, vector<16x32xf32>
    %cst = arith.constant dense<0.000000e+00> : vector<16xf32>
    %1 = vector.multi_reduction <add>, %0, %cst [1] : vector<16x32xf32> to vector<16xf32>
    %2 = vector.shape_cast %1 : vector<16xf32> to vector<16x1xf32>
    %cst_1 = arith.constant 3.200000e+01 : f32
    %3 = vector.broadcast %cst_1 : f32 to vector<16x1xf32>
    %4 = arith.divf %2, %3 : vector<16x1xf32>
    %5 = vector.broadcast %4 : vector<16x1xf32> to vector<16x32xf32>
    %6 = arith.subf %0, %5 : vector<16x32xf32>
    %7 = arith.mulf %6, %6 : vector<16x32xf32>
    %cst_2 = arith.constant dense<0.000000e+00> : vector<16xf32>
    %8 = vector.multi_reduction <add>, %7, %cst_2 [1] : vector<16x32xf32> to vector<16xf32>
    %9 = vector.shape_cast %8 : vector<16xf32> to vector<16x1xf32>
    %cst_3 = arith.constant 3.100000e+01 : f32
    %10 = vector.broadcast %cst_3 : f32 to vector<16x1xf32>
    %11 = arith.divf %9, %10 : vector<16x1xf32>
    %12 = math.sqrt %11 : vector<16x1xf32>
    %cst_4 = arith.constant 9.99999997E-7 : f32
    %13 = vector.broadcast %cst_4 : f32 to vector<16x1xf32>
    %14 = arith.addf %12, %13 : vector<16x1xf32>
    %15 = tpu.reciprocal %14 : vector<16x1xf32> -> vector<16x1xf32>
    %c0_5 = arith.constant 0 : index
    %c0_6 = arith.constant 0 : index
    %16 = vector.load %arg2[%c0_5, %c0_6] : memref<1x32xf32, #tpu.memory_space<vmem>>, vector<1x32xf32>
    %17 = vector.broadcast %4 : vector<16x1xf32> to vector<16x32xf32>
    %18 = arith.subf %0, %17 : vector<16x32xf32>
    %19 = vector.broadcast %16 : vector<1x32xf32> to vector<16x32xf32>
    %20 = arith.mulf %19, %18 : vector<16x32xf32>
    %21 = vector.broadcast %15 : vector<16x1xf32> to vector<16x32xf32>
    %22 = arith.mulf %20, %21 : vector<16x32xf32>
    %c0_7 = arith.constant 0 : index
    %c0_8 = arith.constant 0 : index
    %23 = vector.load %arg3[%c0_7, %c0_8] : memref<1x32xf32, #tpu.memory_space<vmem>>, vector<1x32xf32>
    %24 = vector.broadcast %23 : vector<1x32xf32> to vector<16x32xf32>
    %25 = arith.addf %22, %24 : vector<16x32xf32>
    %26 = arith.truncf %25 : vector<16x32xf32> to vector<16x32xbf16>
    %c0_9 = arith.constant 0 : index
    %c0_10 = arith.constant 0 : index
    %27 = vector.load %arg4[%c0_9, %c0_10] : memref<32x32xbf16, #tpu.memory_space<vmem>>, vector<32x32xbf16>
    %c0_11 = arith.constant 0 : index
    %c0_12 = arith.constant 0 : index
    %28 = vector.load %arg5[%c0_11, %c0_12] : memref<1x32xf32, #tpu.memory_space<vmem>>, vector<1x32xf32>
    %cst_13 = arith.constant dense<0.000000e+00> : vector<16x32xf32>
    %29 = tpu.matmul %26, %27, %cst_13 {dimension_numbers = #tpu.dot_dimension_numbers<[1], [0], [0], [1], [0, 0, 1, 1], [], []>} : vector<16x32xbf16>, vector<32x32xbf16>, vector<16x32xf32> -> vector<16x32xf32>
    %30 = vector.broadcast %28 : vector<1x32xf32> to vector<16x32xf32>
    %31 = arith.addf %29, %30 : vector<16x32xf32>
    %32 = arith.truncf %31 : vector<16x32xf32> to vector<16x32xbf16>
    %c0_14 = arith.constant 0 : index
    %c0_15 = arith.constant 0 : index
    %33 = vector.load %arg6[%c0_14, %c0_15] : memref<16x32xbf16, #tpu.memory_space<vmem>>, vector<16x32xbf16>
    tpu.vector_store %arg6[%c0_14, %c0_15], %32 {strides = array<i32>} : memref<16x32xbf16, #tpu.memory_space<vmem>>, vector<16x32xbf16>,
    return
  }
  func.func @transform_0(%arg0: i32) -> (i32, i32) {
    %c0_i32 = arith.constant 0 : i32
    %c0_i32_0 = arith.constant 0 : i32
    return %arg0, %c0_i32 : i32, i32
  }
  func.func @transform_1(%arg0: i32) -> (i32, i32) {
    %c0_i32 = arith.constant 0 : i32
    %c0_i32_0 = arith.constant 0 : i32
    %c0_i32_1 = arith.constant 0 : i32
    return %c0_i32, %c0_i32_0 : i32, i32
  }
  func.func @transform_2(%arg0: i32) -> (i32, i32) {
    %c0_i32 = arith.constant 0 : i32
    %c0_i32_0 = arith.constant 0 : i32
    %c0_i32_1 = arith.constant 0 : i32
    return %c0_i32, %c0_i32_0 : i32, i32
  }
  func.func @transform_3(%arg0: i32) -> (i32, i32) {
    %c0_i32 = arith.constant 0 : i32
    %c0_i32_0 = arith.constant 0 : i32
    %c0_i32_1 = arith.constant 0 : i32
    return %c0_i32, %c0_i32_0 : i32, i32
  }
  func.func @transform_4(%arg0: i32) -> (i32, i32) {
    %c0_i32 = arith.constant 0 : i32
    %c0_i32_0 = arith.constant 0 : i32
    %c0_i32_1 = arith.constant 0 : i32
    return %c0_i32, %c0_i32_0 : i32, i32
  }
  func.func @transform_5(%arg0: i32) -> (i32, i32) {
    %c0_i32 = arith.constant 0 : i32
    %c0_i32_0 = arith.constant 0 : i32
    return %arg0, %c0_i32 : i32, i32
  }
}

module attributes {stable_mosaic.version = 11 : i64} {
  func.func @_proj_kernel(%arg0: i32, %arg1: memref<16x32xf32, #tpu.memory_space<vmem>>, %arg2: memref<32x32xbf16, #tpu.memory_space<vmem>>, %arg3: memref<1x32xf32, #tpu.memory_space<vmem>>, %arg4: memref<32x32xbf16, #tpu.memory_space<vmem>>, %arg5: memref<1x32xf32, #tpu.memory_space<vmem>>, %arg6: memref<16x32xbf16, #tpu.memory_space<vmem>>, %arg7: memref<16x32xbf16, #tpu.memory_space<vmem>>) attributes {dimension_semantics = [#tpu.dimension_semantics<parallel>], iteration_bounds = array<i64: 1>, scalar_prefetch = 0 : i64, scratch_operands = 0 : i64, tpu.core_type = #tpu.core_type<tc>, window_params = [{transform_indices = @transform_0, window_bounds = array<i64: 16, 32>}, {pipeline_mode = #tpu.pipeline_mode<synchronous>, transform_indices = @transform_1, window_bounds = array<i64: 32, 32>}, {pipeline_mode = #tpu.pipeline_mode<synchronous>, transform_indices = @transform_2, window_bounds = array<i64: 1, 32>}, {pipeline_mode = #tpu.pipeline_mode<synchronous>, transform_indices = @transform_3, window_bounds = array<i64: 32, 32>}, {pipeline_mode = #tpu.pipeline_mode<synchronous>, transform_indices = @transform_4, window_bounds = array<i64: 1, 32>}, {transform_indices = @transform_5, window_bounds = array<i64: 16, 32>}, {transform_indices = @transform_6, window_bounds = array<i64: 16, 32>}]} {
    %c0 = arith.constant 0 : index
    %c0_0 = arith.constant 0 : index
    %0 = vector.load %arg1[%c0, %c0_0] : memref<16x32xf32, #tpu.memory_space<vmem>>, vector<16x32xf32>
    %1 = arith.truncf %0 : vector<16x32xf32> to vector<16x32xbf16>
    %c0_1 = arith.constant 0 : index
    %c0_2 = arith.constant 0 : index
    %2 = vector.load %arg2[%c0_1, %c0_2] : memref<32x32xbf16, #tpu.memory_space<vmem>>, vector<32x32xbf16>
    %c0_3 = arith.constant 0 : index
    %c0_4 = arith.constant 0 : index
    %3 = vector.load %arg3[%c0_3, %c0_4] : memref<1x32xf32, #tpu.memory_space<vmem>>, vector<1x32xf32>
    %cst = arith.constant dense<0.000000e+00> : vector<16x32xf32>
    %4 = tpu.matmul %1, %2, %cst {dimension_numbers = #tpu.dot_dimension_numbers<[1], [0], [0], [1], [0, 0, 1, 1], [], []>} : vector<16x32xbf16>, vector<32x32xbf16>, vector<16x32xf32> -> vector<16x32xf32>
    %5 = vector.broadcast %3 : vector<1x32xf32> to vector<16x32xf32>
    %6 = arith.addf %4, %5 : vector<16x32xf32>
    %7 = arith.truncf %6 : vector<16x32xf32> to vector<16x32xbf16>
    %c0_5 = arith.constant 0 : index
    %c0_6 = arith.constant 0 : index
    %8 = vector.load %arg6[%c0_5, %c0_6] : memref<16x32xbf16, #tpu.memory_space<vmem>>, vector<16x32xbf16>
    tpu.vector_store %arg6[%c0_5, %c0_6], %7 {strides = array<i32>} : memref<16x32xbf16, #tpu.memory_space<vmem>>, vector<16x32xbf16>,
    %c0_7 = arith.constant 0 : index
    %c0_8 = arith.constant 0 : index
    %9 = vector.load %arg4[%c0_7, %c0_8] : memref<32x32xbf16, #tpu.memory_space<vmem>>, vector<32x32xbf16>
    %c0_9 = arith.constant 0 : index
    %c0_10 = arith.constant 0 : index
    %10 = vector.load %arg5[%c0_9, %c0_10] : memref<1x32xf32, #tpu.memory_space<vmem>>, vector<1x32xf32>
    %cst_11 = arith.constant dense<0.000000e+00> : vector<16x32xf32>
    %11 = tpu.matmul %1, %9, %cst_11 {dimension_numbers = #tpu.dot_dimension_numbers<[1], [0], [0], [1], [0, 0, 1, 1], [], []>} : vector<16x32xbf16>, vector<32x32xbf16>, vector<16x32xf32> -> vector<16x32xf32>
    %12 = vector.broadcast %10 : vector<1x32xf32> to vector<16x32xf32>
    %13 = arith.addf %11, %12 : vector<16x32xf32>
    %14 = arith.truncf %13 : vector<16x32xf32> to vector<16x32xbf16>
    %c0_12 = arith.constant 0 : index
    %c0_13 = arith.constant 0 : index
    %15 = vector.load %arg7[%c0_12, %c0_13] : memref<16x32xbf16, #tpu.memory_space<vmem>>, vector<16x32xbf16>
    tpu.vector_store %arg7[%c0_12, %c0_13], %14 {strides = array<i32>} : memref<16x32xbf16, #tpu.memory_space<vmem>>, vector<16x32xbf16>,
    return
  }
  func.func @transform_0(%arg0: i32) -> (i32, i32) {
    %c0_i32 = arith.constant 0 : i32
    %c0_i32_0 = arith.constant 0 : i32
    return %arg0, %c0_i32 : i32, i32
  }
  func.func @transform_1(%arg0: i32) -> (i32, i32) {
    %c0_i32 = arith.constant 0 : i32
    %c0_i32_0 = arith.constant 0 : i32
    %c0_i32_1 = arith.constant 0 : i32
    return %c0_i32, %c0_i32_0 : i32, i32
  }
  func.func @transform_2(%arg0: i32) -> (i32, i32) {
    %c0_i32 = arith.constant 0 : i32
    %c0_i32_0 = arith.constant 0 : i32
    %c0_i32_1 = arith.constant 0 : i32
    return %c0_i32, %c0_i32_0 : i32, i32
  }
  func.func @transform_3(%arg0: i32) -> (i32, i32) {
    %c0_i32 = arith.constant 0 : i32
    %c0_i32_0 = arith.constant 0 : i32
    %c0_i32_1 = arith.constant 0 : i32
    return %c0_i32, %c0_i32_0 : i32, i32
  }
  func.func @transform_4(%arg0: i32) -> (i32, i32) {
    %c0_i32 = arith.constant 0 : i32
    %c0_i32_0 = arith.constant 0 : i32
    %c0_i32_1 = arith.constant 0 : i32
    return %c0_i32, %c0_i32_0 : i32, i32
  }
  func.func @transform_5(%arg0: i32) -> (i32, i32) {
    %c0_i32 = arith.constant 0 : i32
    %c0_i32_0 = arith.constant 0 : i32
    return %arg0, %c0_i32 : i32, i32
  }
  func.func @transform_6(%arg0: i32) -> (i32, i32) {
    %c0_i32 = arith.constant 0 : i32
    %c0_i32_0 = arith.constant 0 : i32
    return %arg0, %c0_i32 : i32, i32
  }
}

module attributes {stable_mosaic.version = 11 : i64} {
  func.func @_ln_ffn_res_kernel(%arg0: i32, %arg1: memref<16x32xf32, #tpu.memory_space<vmem>>, %arg2: memref<1x32xf32, #tpu.memory_space<vmem>>, %arg3: memref<1x32xf32, #tpu.memory_space<vmem>>, %arg4: memref<32x64xbf16, #tpu.memory_space<vmem>>, %arg5: memref<1x64xf32, #tpu.memory_space<vmem>>, %arg6: memref<64x32xbf16, #tpu.memory_space<vmem>>, %arg7: memref<1x32xf32, #tpu.memory_space<vmem>>, %arg8: memref<16x32xf32, #tpu.memory_space<vmem>>) attributes {dimension_semantics = [#tpu.dimension_semantics<parallel>], iteration_bounds = array<i64: 1>, scalar_prefetch = 0 : i64, scratch_operands = 0 : i64, tpu.core_type = #tpu.core_type<tc>, window_params = [{transform_indices = @transform_0, window_bounds = array<i64: 16, 32>}, {pipeline_mode = #tpu.pipeline_mode<synchronous>, transform_indices = @transform_1, window_bounds = array<i64: 1, 32>}, {pipeline_mode = #tpu.pipeline_mode<synchronous>, transform_indices = @transform_2, window_bounds = array<i64: 1, 32>}, {pipeline_mode = #tpu.pipeline_mode<synchronous>, transform_indices = @transform_3, window_bounds = array<i64: 32, 64>}, {pipeline_mode = #tpu.pipeline_mode<synchronous>, transform_indices = @transform_4, window_bounds = array<i64: 1, 64>}, {pipeline_mode = #tpu.pipeline_mode<synchronous>, transform_indices = @transform_5, window_bounds = array<i64: 64, 32>}, {pipeline_mode = #tpu.pipeline_mode<synchronous>, transform_indices = @transform_6, window_bounds = array<i64: 1, 32>}, {transform_indices = @transform_7, window_bounds = array<i64: 16, 32>}]} {
    %c0 = arith.constant 0 : index
    %c0_0 = arith.constant 0 : index
    %0 = vector.load %arg1[%c0, %c0_0] : memref<16x32xf32, #tpu.memory_space<vmem>>, vector<16x32xf32>
    %cst = arith.constant dense<0.000000e+00> : vector<16xf32>
    %1 = vector.multi_reduction <add>, %0, %cst [1] : vector<16x32xf32> to vector<16xf32>
    %2 = vector.shape_cast %1 : vector<16xf32> to vector<16x1xf32>
    %cst_1 = arith.constant 3.200000e+01 : f32
    %3 = vector.broadcast %cst_1 : f32 to vector<16x1xf32>
    %4 = arith.divf %2, %3 : vector<16x1xf32>
    %5 = vector.broadcast %4 : vector<16x1xf32> to vector<16x32xf32>
    %6 = arith.subf %0, %5 : vector<16x32xf32>
    %7 = arith.mulf %6, %6 : vector<16x32xf32>
    %cst_2 = arith.constant dense<0.000000e+00> : vector<16xf32>
    %8 = vector.multi_reduction <add>, %7, %cst_2 [1] : vector<16x32xf32> to vector<16xf32>
    %9 = vector.shape_cast %8 : vector<16xf32> to vector<16x1xf32>
    %cst_3 = arith.constant 3.100000e+01 : f32
    %10 = vector.broadcast %cst_3 : f32 to vector<16x1xf32>
    %11 = arith.divf %9, %10 : vector<16x1xf32>
    %12 = math.sqrt %11 : vector<16x1xf32>
    %cst_4 = arith.constant 9.99999997E-7 : f32
    %13 = vector.broadcast %cst_4 : f32 to vector<16x1xf32>
    %14 = arith.addf %12, %13 : vector<16x1xf32>
    %15 = tpu.reciprocal %14 : vector<16x1xf32> -> vector<16x1xf32>
    %c0_5 = arith.constant 0 : index
    %c0_6 = arith.constant 0 : index
    %16 = vector.load %arg2[%c0_5, %c0_6] : memref<1x32xf32, #tpu.memory_space<vmem>>, vector<1x32xf32>
    %17 = vector.broadcast %4 : vector<16x1xf32> to vector<16x32xf32>
    %18 = arith.subf %0, %17 : vector<16x32xf32>
    %19 = vector.broadcast %16 : vector<1x32xf32> to vector<16x32xf32>
    %20 = arith.mulf %19, %18 : vector<16x32xf32>
    %21 = vector.broadcast %15 : vector<16x1xf32> to vector<16x32xf32>
    %22 = arith.mulf %20, %21 : vector<16x32xf32>
    %c0_7 = arith.constant 0 : index
    %c0_8 = arith.constant 0 : index
    %23 = vector.load %arg3[%c0_7, %c0_8] : memref<1x32xf32, #tpu.memory_space<vmem>>, vector<1x32xf32>
    %24 = vector.broadcast %23 : vector<1x32xf32> to vector<16x32xf32>
    %25 = arith.addf %22, %24 : vector<16x32xf32>
    %26 = arith.truncf %25 : vector<16x32xf32> to vector<16x32xbf16>
    %c0_9 = arith.constant 0 : index
    %c0_10 = arith.constant 0 : index
    %27 = vector.load %arg4[%c0_9, %c0_10] : memref<32x64xbf16, #tpu.memory_space<vmem>>, vector<32x64xbf16>
    %cst_11 = arith.constant dense<0.000000e+00> : vector<16x64xf32>
    %28 = tpu.matmul %26, %27, %cst_11 {dimension_numbers = #tpu.dot_dimension_numbers<[1], [0], [0], [1], [0, 0, 1, 1], [], []>} : vector<16x32xbf16>, vector<32x64xbf16>, vector<16x64xf32> -> vector<16x64xf32>
    %c0_12 = arith.constant 0 : index
    %c0_13 = arith.constant 0 : index
    %29 = vector.load %arg5[%c0_12, %c0_13] : memref<1x64xf32, #tpu.memory_space<vmem>>, vector<1x64xf32>
    %30 = vector.broadcast %29 : vector<1x64xf32> to vector<16x64xf32>
    %31 = arith.addf %28, %30 : vector<16x64xf32>
    %cst_14 = arith.constant 0.000000e+00 : f32
    %32 = vector.broadcast %cst_14 : f32 to vector<16x64xf32>
    %33 = arith.maximumf %31, %32 : vector<16x64xf32>
    %34 = arith.truncf %33 : vector<16x64xf32> to vector<16x64xbf16>
    %c0_15 = arith.constant 0 : index
    %c0_16 = arith.constant 0 : index
    %35 = vector.load %arg6[%c0_15, %c0_16] : memref<64x32xbf16, #tpu.memory_space<vmem>>, vector<64x32xbf16>
    %cst_17 = arith.constant dense<0.000000e+00> : vector<16x32xf32>
    %36 = tpu.matmul %34, %35, %cst_17 {dimension_numbers = #tpu.dot_dimension_numbers<[1], [0], [0], [1], [0, 0, 1, 1], [], []>} : vector<16x64xbf16>, vector<64x32xbf16>, vector<16x32xf32> -> vector<16x32xf32>
    %c0_18 = arith.constant 0 : index
    %c0_19 = arith.constant 0 : index
    %37 = vector.load %arg7[%c0_18, %c0_19] : memref<1x32xf32, #tpu.memory_space<vmem>>, vector<1x32xf32>
    %38 = vector.broadcast %37 : vector<1x32xf32> to vector<16x32xf32>
    %39 = arith.addf %36, %38 : vector<16x32xf32>
    %40 = arith.addf %0, %39 : vector<16x32xf32>
    %c0_20 = arith.constant 0 : index
    %c0_21 = arith.constant 0 : index
    %41 = vector.load %arg8[%c0_20, %c0_21] : memref<16x32xf32, #tpu.memory_space<vmem>>, vector<16x32xf32>
    tpu.vector_store %arg8[%c0_20, %c0_21], %40 {strides = array<i32>} : memref<16x32xf32, #tpu.memory_space<vmem>>, vector<16x32xf32>,
    return
  }
  func.func @transform_0(%arg0: i32) -> (i32, i32) {
    %c0_i32 = arith.constant 0 : i32
    %c0_i32_0 = arith.constant 0 : i32
    return %arg0, %c0_i32 : i32, i32
  }
  func.func @transform_1(%arg0: i32) -> (i32, i32) {
    %c0_i32 = arith.constant 0 : i32
    %c0_i32_0 = arith.constant 0 : i32
    %c0_i32_1 = arith.constant 0 : i32
    return %c0_i32, %c0_i32_0 : i32, i32
  }
  func.func @transform_2(%arg0: i32) -> (i32, i32) {
    %c0_i32 = arith.constant 0 : i32
    %c0_i32_0 = arith.constant 0 : i32
    %c0_i32_1 = arith.constant 0 : i32
    return %c0_i32, %c0_i32_0 : i32, i32
  }
  func.func @transform_3(%arg0: i32) -> (i32, i32) {
    %c0_i32 = arith.constant 0 : i32
    %c0_i32_0 = arith.constant 0 : i32
    %c0_i32_1 = arith.constant 0 : i32
    return %c0_i32, %c0_i32_0 : i32, i32
  }
  func.func @transform_4(%arg0: i32) -> (i32, i32) {
    %c0_i32 = arith.constant 0 : i32
    %c0_i32_0 = arith.constant 0 : i32
    %c0_i32_1 = arith.constant 0 : i32
    return %c0_i32, %c0_i32_0 : i32, i32
  }
  func.func @transform_5(%arg0: i32) -> (i32, i32) {
    %c0_i32 = arith.constant 0 : i32
    %c0_i32_0 = arith.constant 0 : i32
    %c0_i32_1 = arith.constant 0 : i32
    return %c0_i32, %c0_i32_0 : i32, i32
  }
  func.func @transform_6(%arg0: i32) -> (i32, i32) {
    %c0_i32 = arith.constant 0 : i32
    %c0_i32_0 = arith.constant 0 : i32
    %c0_i32_1 = arith.constant 0 : i32
    return %c0_i32, %c0_i32_0 : i32, i32
  }
  func.func @transform_7(%arg0: i32) -> (i32, i32) {
    %c0_i32 = arith.constant 0 : i32
    %c0_i32_0 = arith.constant 0 : i32
    return %arg0, %c0_i32 : i32, i32
  }
}

</mosaic_0001>

<bundles_post_ra>
// kernel: decoder_layer.8
= control target key start
LH: loop header
LB: loop body
LE: loop exit
PB: predicated region body
PF: predicated region fallthrough
CT: control target
= control target key end

     0   :  { %v231_v0 = vmov 0.0   ;;  %vm232_vm0 = vmmov 0   ;;  %vm49_vm1 = vcmask 261120   ;;  %vm102_vm2 = vcmask 257024   ;;  %s308_s1 = inlined_call_operand.vmem [shape: bf16[32,32], index: 1, kind: input, shape index: {}]   ;;  %s309_s3 = inlined_call_operand.vmem [shape: bf16[32,32], index: 3, kind: input, shape index: {}]   ;;  %s310_s0 = inlined_call_operand.vmem [shape: f32[16,32], index: 0, kind: input, shape index: {}]   ;;  %s311_s2 = inlined_call_operand.vmem [shape: f32[1,32], index: 2, kind: input, shape index: {}]   ;;  %s312_s4 = inlined_call_operand.vmem [shape: f32[1,32], index: 4, kind: input, shape index: {}]   ;;  %s313_s5 = inlined_call_operand.vmem [shape: bf16[16,32], index: 5, kind: output, shape index: {0}]   ;;  %s314_s6 = inlined_call_operand.vmem [shape: bf16[16,32], index: 6, kind: output, shape index: {1}]  }
   0x1   :  { %209 = vmatprep.subr.bf16.mxu0 %v231_v0  ;;  %217 = vmatprep.subr.bf16.mxu1 %v231_v0  ;;  %v227_v1 = vld [vmem:[%s308_s1] sm:$0xff]   ;;  %v229_v3 = vld [vmem:[%s308_s1 + $0x8] sm:$0xff]  }
   0x2   :  { %v228_v2 = vld [vmem:[%s309_s3] sm:$0xff]   ;;  %213 = vmatprep.mubr.msk.bf16.mxu0 %vm232_vm0, %v231_v0  ;;  %221 = vmatprep.mubr.msk.bf16.mxu1 %vm232_vm0, %v231_v0  ;;  %v230_v4 = vld [vmem:[%s309_s3 + $0x8] sm:$0xff]  }
   0x3   :  { %210 = vmatpush3.bf16.msra.mxu0 %v227_v1  ;;  %218 = vmatpush3.bf16.msra.mxu1 %v228_v2  ;;  %v23_v5 = vld [vmem:[%s310_s0] sm:$0xff]  ;;  %v24_v6 = vld [vmem:[%s310_s0 + $0x8] sm:$0xff] }
   0x4   :  { %211 = vmatprep.subr.bf16.mxu0 %v231_v0  ;;  %219 = vmatprep.subr.bf16.mxu1 %v231_v0  ;;  %v25_v7 = vpack.c.bf16 %v24_v6, %v23_v5  ;;  %v187_v8 = vld [vmem:[%s311_s2] ss:$0 sm:$0xff] }
   0x5   :  { %v193_v9 = vld [vmem:[%s312_s4] ss:$0 sm:$0xff] }
   0x7   :  { %212 = vmatpush3.bf16.msra.mxu0 %v229_v3  ;;  %220 = vmatpush3.bf16.msra.mxu1 %v230_v4 }
   0xa   :  { %214 = vmatmul.mubr.msk.bf16.vlgmr.msra.gmra.mrb[0].mxu0 %vm49_vm1, %v25_v7  ;;  %222 = vmatmul.mubr.msk.bf16.vlgmr.msra.gmra.mrb[0].mxu1 %vm49_vm1, %v25_v7 }
  0xdd   :  { %v87_v10 = vpop.f32.mrb[0].mxu0  ;;  %v162_v12 = vpop.f32.mrb[0].mxu1 }
  0xde   :  { %v88_v11 = vadd.f32 %v187_v8, %v87_v10  ;;  %v215_v13 = vpop.f32.mrb[1].mxu0  ;;  %v163_v14 = vadd.f32 %v193_v9, %v162_v12  ;;  %v223_v15 = vpop.f32.mrb[1].mxu1 }
  0xdf   :  { %v90_v16 = vpop.f32.mrb[2].mxu0  ;;  %v165_v19 = vpop.f32.mrb[2].mxu1 }
  0xe0   :  { %v199_v17 = vpack.c.bf16 %v88_v11, %v88_v11  ;;  %v91_v18 = vadd.f32 %v187_v8, %v90_v16  ;;  %v216_v20 = vpop.f32.mrb[3].mxu0  ;;  %v201_v21 = vpack.c.bf16 %v163_v14, %v163_v14  ;;  %v166_v22 = vadd.f32 %v193_v9, %v165_v19  ;;  %v224_v23 = vpop.f32.mrb[3].mxu1 }
  0xe2   :  { %103 = vst.msk [vmem:[%s313_s5] sm:$0xf] %vm102_vm2, %v199_v17  ;;  %v200_v24 = vpack.c.bf16 %v91_v18, %v91_v18  ;;  %177 = vst.msk [vmem:[%s314_s6] sm:$0xf] %vm102_vm2, %v201_v21  ;;  %v202_v25 = vpack.c.bf16 %v166_v22, %v166_v22 }
  0xe4   :  { %104 = vst.msk [vmem:[%s313_s5 + $0x4] sm:$0xf] %vm102_vm2, %v200_v24  ;;  %178 = vst.msk [vmem:[%s314_s6 + $0x4] sm:$0xf] %vm102_vm2, %v202_v25 }

// kernel: decoder_layer.9
= control target key start
LH: loop header
LB: loop body
LE: loop exit
PB: predicated region body
PF: predicated region fallthrough
CT: control target
= control target key end

     0   :  { %vm23_vm0 = vcmask 261120   ;;  %v200_v14 = vmov 0.0   ;;  %vm201_vm1 = vmmov 0   ;;  %vm160_vm6 = vcmask 257024   ;;  %s264_s0 = inlined_call_operand.vmem [shape: f32[16,32], index: 0, kind: input, shape index: {}]   ;;  %s265_s3 = inlined_call_operand.vmem [shape: bf16[32,32], index: 3, kind: input, shape index: {}]   ;;  %s266_s1 = inlined_call_operand.vmem [shape: f32[1,32], index: 1, kind: input, shape index: {}]   ;;  %s267_s2 = inlined_call_operand.vmem [shape: f32[1,32], index: 2, kind: input, shape index: {}]   ;;  %s268_s4 = inlined_call_operand.vmem [shape: f32[1,32], index: 4, kind: input, shape index: {}]   ;;  %s269_s5 = inlined_call_operand.vmem [shape: bf16[16,32], index: 5, kind: output, shape index: {}]  }
   0x1   :  { %v21_v0 = vld [vmem:[%s264_s0] sm:$0xff]  ;;  %v22_v1 = vld [vmem:[%s264_s0 + $0x8] sm:$0xff]  ;;  %180 = vmatprep.subr.bf16.mxu0 %v200_v14  ;;  %184 = vmatprep.mubr.msk.bf16.mxu0 %vm201_vm1, %v200_v14 }
   0x2   :  { %v24_v2 = vsel %vm23_vm0, %v21_v0, 0.0  ;;  %v27_v3 = vsel %vm23_vm0, %v22_v1, 0.0  ;;  %v190_v15 = vld [vmem:[%s265_s3] sm:$0xff]   ;;  %v191_v16 = vld [vmem:[%s265_s3 + $0x8] sm:$0xff]  }
   0x3   :  { %25 = vadd.xlane.f32.xlu0 %v24_v2  ;;  %181 = vmatpush3.bf16.msra.mxu0 %v190_v15  ;;  %v167_v33 = vld [vmem:[%s266_s1] ss:$0 sm:$0xff] }
   0x4   :  { %182 = vmatprep.subr.bf16.mxu0 %v200_v14  ;;  %v168_v39 = vld [vmem:[%s267_s2] ss:$0 sm:$0xff] }
   0x5   :  { %v169_v44 = vld [vmem:[%s268_s4] ss:$0 sm:$0xff] }
   0x7   :  { %28 = vadd.xlane.f32.xlu0 %v27_v3  ;;  %183 = vmatpush3.bf16.msra.mxu0 %v191_v16 }
  0x90   :  { %v26_v4 = vpop.xlane.xlu0 %25 }
  0x91   :  { %v31_v5 = vmul.f32 0.03125, %v26_v4 }
  0x93   :  { %v33_v6 = vsub.f32 %v21_v0, %v31_v5 }
  0x94   :  { %v29_v7 = vpop.xlane.xlu0 %28 }
  0x95   :  { %v32_v8 = vmul.f32 0.03125, %v29_v7  ;;  %v35_v9 = vmul.f32 %v33_v6, %v33_v6  ;;  %v71_v35 = vmul.f32 %v167_v33, %v33_v6 }
  0x97   :  { %v34_v10 = vsub.f32 %v22_v1, %v32_v8  ;;  %v37_v11 = vsel %vm23_vm0, %v35_v9, 0.0 }
  0x98   :  { %38 = vadd.xlane.f32.xlu1 %v37_v11 }
  0x99   :  { %v36_v12 = vmul.f32 %v34_v10, %v34_v10  ;;  %v72_v36 = vmul.f32 %v167_v33, %v34_v10 }
  0x9b   :  { %v40_v13 = vsel %vm23_vm0, %v36_v12, 0.0 }
  0x9c   :  { %41 = vadd.xlane.f32.xlu1 %v40_v13 }
 0x125   :  { %v39_v17 = vpop.xlane.xlu1 %38 }
 0x126   :  { %v44_v18 = vmul.f32 0.032258064, %v39_v17 }
 0x128   :  { %192 = vrsqrt.f32 %v44_v18  ;;  %vm48_vm2 = vcmp.eq.f32.partialorder %v44_v18, inf  ;;  %v51_v23 = vand.u32 2147483648, %v44_v18  ;;  %vm50_vm3 = vcmp.eq.f32.partialorder %v44_v18, 0.0 }
 0x129   :  { %v42_v19 = vpop.xlane.xlu1 %41 }
 0x12a   :  { %v45_v20 = vmul.f32 0.032258064, %v42_v19 }
 0x12c   :  { %194 = vrsqrt.f32 %v45_v20  ;;  %vm55_vm4 = vcmp.eq.f32.partialorder %v45_v20, inf  ;;  %v58_v29 = vand.u32 2147483648, %v45_v20  ;;  %vm57_vm5 = vcmp.eq.f32.partialorder %v45_v20, 0.0 }
 0x132   :  { %v193_v21 = vpop.eup %192 }
 0x133   :  { %v47_v22 = vmul.f32 %v193_v21, %v44_v18 }
 0x135   :  { %v49_v24 = vsel %vm48_vm2, %v44_v18, %v47_v22 }
 0x136   :  { %v195_v25 = vpop.eup %194  ;;  %v52_v26 = vsel %vm50_vm3, %v51_v23, %v49_v24 }
 0x137   :  { %v60_v27 = vadd.f32 1e-06, %v52_v26  ;;  %v54_v28 = vmul.f32 %v195_v25, %v45_v20 }
 0x139   :  { %196 = vrcp.f32 %v60_v27  ;;  %v56_v30 = vsel %vm55_vm4, %v45_v20, %v54_v28 }
 0x13a   :  { %v59_v31 = vsel %vm57_vm5, %v58_v29, %v56_v30 }
 0x13b   :  { %v61_v32 = vadd.f32 1e-06, %v59_v31 }
 0x13d   :  { %198 = vrcp.f32 %v61_v32 }
 0x143   :  { %v197_v34 = vpop.eup %196 }
 0x144   :  { %v73_v37 = vmul.f32 %v197_v34, %v71_v35 }
 0x146   :  { %v82_v41 = vadd.f32 %v168_v39, %v73_v37 }
 0x147   :  { %v199_v38 = vpop.eup %198 }
 0x148   :  { %v74_v40 = vmul.f32 %v199_v38, %v72_v36 }
 0x14a   :  { %v83_v42 = vadd.f32 %v168_v39, %v74_v40 }
 0x14c   :  { %v84_v43 = vpack.c.bf16 %v83_v42, %v82_v41 }
 0x14e   :  { %185 = vmatmul.mubr.msk.bf16.vlgmr.msra.gmra.mrb[0].mxu0 %vm23_vm0, %v84_v43 }
 0x221   :  { %v145_v45 = vpop.f32.mrb[0].mxu0 }
 0x222   :  { %v146_v46 = vadd.f32 %v169_v44, %v145_v45  ;;  %v186_v47 = vpop.f32.mrb[1].mxu0 }
 0x223   :  { %v148_v48 = vpop.f32.mrb[2].mxu0 }
 0x224   :  { %v175_v49 = vpack.c.bf16 %v146_v46, %v146_v46  ;;  %v149_v50 = vadd.f32 %v169_v44, %v148_v48  ;;  %v187_v51 = vpop.f32.mrb[3].mxu0 }
 0x226   :  { %161 = vst.msk [vmem:[%s269_s5] sm:$0xf] %vm160_vm6, %v175_v49  ;;  %v176_v52 = vpack.c.bf16 %v149_v50, %v149_v50 }
 0x228   :  { %162 = vst.msk [vmem:[%s269_s5 + $0x4] sm:$0xf] %vm160_vm6, %v176_v52 }

// kernel: decoder_layer.6
= control target key start
LH: loop header
LB: loop body
LE: loop exit
PB: predicated region body
PF: predicated region fallthrough
CT: control target
= control target key end

     0   :  { %vm38_vm0 = vcmask 261120   ;;  %v413_v14 = vmov 0.0   ;;  %vm414_vm1 = vmmov 0   ;;  %vm175_vm6 = vcmask 257024   ;;  %s548_s0 = inlined_call_operand.vmem [shape: f32[16,32], index: 0, kind: input, shape index: {}]   ;;  %s549_s3 = inlined_call_operand.vmem [shape: bf16[32,32], index: 3, kind: input, shape index: {}]   ;;  %s550_s5 = inlined_call_operand.vmem [shape: bf16[32,32], index: 5, kind: input, shape index: {}]   ;;  %s551_s7 = inlined_call_operand.vmem [shape: bf16[32,32], index: 7, kind: input, shape index: {}]   ;;  %s552_s1 = inlined_call_operand.vmem [shape: f32[1,32], index: 1, kind: input, shape index: {}]   ;;  %s553_s2 = inlined_call_operand.vmem [shape: f32[1,32], index: 2, kind: input, shape index: {}]   ;;  %s554_s4 = inlined_call_operand.vmem [shape: f32[1,32], index: 4, kind: input, shape index: {}]   ;;  %s555_s6 = inlined_call_operand.vmem [shape: f32[1,32], index: 6, kind: input, shape index: {}]   ;;  %s556_s9 = inlined_call_operand.vmem [shape: bf16[16,32], index: 9, kind: output, shape index: {0}]   ;;  %s557_s10 = inlined_call_operand.vmem [shape: bf16[16,32], index: 10, kind: output, shape index: {1}]   ;;  %s558_s8 = inlined_call_operand.vmem [shape: f32[1,32], index: 8, kind: input, shape index: {}]   ;;  %s559_s11 = inlined_call_operand.vmem [shape: bf16[16,32], index: 11, kind: output, shape index: {2}]  }
   0x1   :  { %v36_v0 = vld [vmem:[%s548_s0] sm:$0xff]  ;;  %v37_v1 = vld [vmem:[%s548_s0 + $0x8] sm:$0xff]  ;;  %373 = vmatprep.subr.bf16.mxu0 %v413_v14  ;;  %381 = vmatprep.subr.bf16.mxu1 %v413_v14 }
   0x2   :  { %v39_v2 = vsel %vm38_vm0, %v36_v0, 0.0  ;;  %v42_v3 = vsel %vm38_vm0, %v37_v1, 0.0  ;;  %v399_v15 = vld [vmem:[%s549_s3] sm:$0xff]   ;;  %377 = vmatprep.mubr.msk.bf16.mxu0 %vm414_vm1, %v413_v14  ;;  %385 = vmatprep.mubr.msk.bf16.mxu1 %vm414_vm1, %v413_v14  ;;  %v401_v17 = vld [vmem:[%s549_s3 + $0x8] sm:$0xff]  }
   0x3   :  { %40 = vadd.xlane.f32.xlu0 %v39_v2  ;;  %v400_v16 = vld [vmem:[%s550_s5] sm:$0xff]   ;;  %374 = vmatpush3.bf16.msra.mxu0 %v399_v15  ;;  %v402_v18 = vld [vmem:[%s550_s5 + $0x8] sm:$0xff]  }
   0x4   :  { %382 = vmatpush3.bf16.msra.mxu1 %v400_v16  ;;  %375 = vmatprep.subr.bf16.mxu0 %v413_v14  ;;  %v338_v35 = vld [vmem:[%s552_s1] ss:$0 sm:$0xff]  ;;  %v404_v47 = vld [vmem:[%s551_s7 + $0x8] sm:$0xff]  }
   0x5   :  { %383 = vmatprep.subr.bf16.mxu1 %v413_v14  ;;  %v339_v41 = vld [vmem:[%s553_s2] ss:$0 sm:$0xff] }
   0x6   :  { %v403_v45 = vld [vmem:[%s551_s7] sm:$0xff]  }
   0x7   :  { %43 = vadd.xlane.f32.xlu0 %v42_v3  ;;  %376 = vmatpush3.bf16.msra.mxu0 %v401_v17  ;;  %v340_v48 = vld [vmem:[%s554_s4] ss:$0 sm:$0xff] }
   0x8   :  { %384 = vmatpush3.bf16.msra.mxu1 %v402_v18  ;;  %389 = vmatprep.subr.bf16.mxu0 %v413_v14  ;;  %v346_v49 = vld [vmem:[%s555_s6] ss:$0 sm:$0xff] }
   0x9   :  { %v352_v2 = vld [vmem:[%s558_s8] ss:$0 sm:$0xff] }
  0x90   :  { %v41_v4 = vpop.xlane.xlu0 %40 }
  0x91   :  { %v46_v5 = vmul.f32 0.03125, %v41_v4 }
  0x93   :  { %v48_v6 = vsub.f32 %v36_v0, %v46_v5 }
  0x94   :  { %v44_v7 = vpop.xlane.xlu0 %43 }
  0x95   :  { %v47_v8 = vmul.f32 0.03125, %v44_v7  ;;  %v50_v9 = vmul.f32 %v48_v6, %v48_v6  ;;  %v86_v37 = vmul.f32 %v338_v35, %v48_v6 }
  0x97   :  { %v49_v10 = vsub.f32 %v37_v1, %v47_v8  ;;  %v52_v11 = vsel %vm38_vm0, %v50_v9, 0.0 }
  0x98   :  { %53 = vadd.xlane.f32.xlu1 %v52_v11 }
  0x99   :  { %v51_v12 = vmul.f32 %v49_v10, %v49_v10  ;;  %v87_v38 = vmul.f32 %v338_v35, %v49_v10 }
  0x9b   :  { %v55_v13 = vsel %vm38_vm0, %v51_v12, 0.0 }
  0x9c   :  { %56 = vadd.xlane.f32.xlu1 %v55_v13 }
 0x125   :  { %v54_v19 = vpop.xlane.xlu1 %53 }
 0x126   :  { %v59_v20 = vmul.f32 0.032258064, %v54_v19 }
 0x128   :  { %405 = vrsqrt.f32 %v59_v20  ;;  %vm63_vm2 = vcmp.eq.f32.partialorder %v59_v20, inf  ;;  %v66_v25 = vand.u32 2147483648, %v59_v20  ;;  %vm65_vm3 = vcmp.eq.f32.partialorder %v59_v20, 0.0 }
 0x129   :  { %v57_v21 = vpop.xlane.xlu1 %56 }
 0x12a   :  { %v60_v22 = vmul.f32 0.032258064, %v57_v21 }
 0x12c   :  { %407 = vrsqrt.f32 %v60_v22  ;;  %vm70_vm4 = vcmp.eq.f32.partialorder %v60_v22, inf  ;;  %v73_v31 = vand.u32 2147483648, %v60_v22  ;;  %vm72_vm5 = vcmp.eq.f32.partialorder %v60_v22, 0.0 }
 0x132   :  { %v406_v23 = vpop.eup %405 }
 0x133   :  { %v62_v24 = vmul.f32 %v406_v23, %v59_v20 }
 0x135   :  { %v64_v26 = vsel %vm63_vm2, %v59_v20, %v62_v24 }
 0x136   :  { %v408_v27 = vpop.eup %407  ;;  %v67_v28 = vsel %vm65_vm3, %v66_v25, %v64_v26 }
 0x137   :  { %v75_v29 = vadd.f32 1e-06, %v67_v28  ;;  %v69_v30 = vmul.f32 %v408_v27, %v60_v22 }
 0x139   :  { %409 = vrcp.f32 %v75_v29  ;;  %v71_v32 = vsel %vm70_vm4, %v60_v22, %v69_v30 }
 0x13a   :  { %v74_v33 = vsel %vm72_vm5, %v73_v31, %v71_v32 }
 0x13b   :  { %v76_v34 = vadd.f32 1e-06, %v74_v33 }
 0x13d   :  { %411 = vrcp.f32 %v76_v34 }
 0x143   :  { %v410_v36 = vpop.eup %409 }
 0x144   :  { %v88_v39 = vmul.f32 %v410_v36, %v86_v37 }
 0x146   :  { %v97_v43 = vadd.f32 %v339_v41, %v88_v39 }
 0x147   :  { %v412_v40 = vpop.eup %411 }
 0x148   :  { %v89_v42 = vmul.f32 %v412_v40, %v87_v38 }
 0x14a   :  { %v98_v44 = vadd.f32 %v339_v41, %v89_v42 }
 0x14c   :  { %v99_v46 = vpack.c.bf16 %v98_v44, %v97_v43 }
 0x14e   :  { %378 = vmatmul.mubr.msk.bf16.vlgmr.msra.gmra.mrb[0].mxu0 %vm38_vm0, %v99_v46  ;;  %386 = vmatmul.mubr.msk.bf16.vlgmr.msra.gmra.mrb[0].mxu1 %vm38_vm0, %v99_v46 }
 0x14f   :  { %390 = vmatpush3.bf16.msra.mxu0 %v403_v45  ;;  %393 = vmatprep.mubr.msk.bf16.mxu0 %vm414_vm1, %v413_v14 }
 0x150   :  { %391 = vmatprep.subr.bf16.mxu0 %v413_v14 }
 0x153   :  { %392 = vmatpush3.bf16.msra.mxu0 %v404_v47 }
 0x156   :  { %394 = vmatmul.mubr.msk.bf16.vlgmr.msra.gmra.mrb[4].mxu0 %vm38_vm0, %v99_v46 }
 0x221   :  { %v160_v50 = vpop.f32.mrb[0].mxu0  ;;  %v235_v51 = vpop.f32.mrb[0].mxu1 }
 0x222   :  { %v161_v52 = vadd.f32 %v340_v48, %v160_v50  ;;  %v236_v53 = vadd.f32 %v346_v49, %v235_v51  ;;  %v379_v54 = vpop.f32.mrb[1].mxu0  ;;  %v387_v55 = vpop.f32.mrb[1].mxu1 }
 0x223   :  { %v163_v56 = vpop.f32.mrb[2].mxu0  ;;  %v238_v57 = vpop.f32.mrb[2].mxu1 }
 0x224   :  { %v358_v58 = vpack.c.bf16 %v161_v52, %v161_v52  ;;  %v360_v59 = vpack.c.bf16 %v236_v53, %v236_v53  ;;  %v164_v60 = vadd.f32 %v340_v48, %v163_v56  ;;  %v239_v61 = vadd.f32 %v346_v49, %v238_v57  ;;  %v380_v62 = vpop.f32.mrb[3].mxu0  ;;  %v388_v63 = vpop.f32.mrb[3].mxu1 }
 0x226   :  { %176 = vst.msk [vmem:[%s556_s9] sm:$0xf] %vm175_vm6, %v358_v58  ;;  %250 = vst.msk [vmem:[%s557_s10] sm:$0xf] %vm175_vm6, %v360_v59  ;;  %v359_v0 = vpack.c.bf16 %v164_v60, %v164_v60  ;;  %v361_v1 = vpack.c.bf16 %v239_v61, %v239_v61 }
 0x228   :  { %177 = vst.msk [vmem:[%s556_s9 + $0x4] sm:$0xf] %vm175_vm6, %v359_v0  ;;  %251 = vst.msk [vmem:[%s557_s10 + $0x4] sm:$0xf] %vm175_vm6, %v361_v1 }
 0x229   :  { %v309_v3 = vpop.f32.mrb[4].mxu0 }
 0x22a   :  { %v310_v4 = vadd.f32 %v352_v2, %v309_v3  ;;  %v395_v5 = vpop.f32.mrb[5].mxu0 }
 0x22b   :  { %v312_v6 = vpop.f32.mrb[6].mxu0 }
 0x22c   :  { %v362_v7 = vpack.c.bf16 %v310_v4, %v310_v4  ;;  %v313_v8 = vadd.f32 %v352_v2, %v312_v6  ;;  %v396_v9 = vpop.f32.mrb[7].mxu0 }
 0x22e   :  { %324 = vst.msk [vmem:[%s559_s11] sm:$0xf] %vm175_vm6, %v362_v7  ;;  %v363_v10 = vpack.c.bf16 %v313_v8, %v313_v8 }
 0x230   :  { %325 = vst.msk [vmem:[%s559_s11 + $0x4] sm:$0xf] %vm175_vm6, %v363_v10 }

// kernel: decoder_layer.7
= control target key start
LH: loop header
LB: loop body
LE: loop exit
PB: predicated region body
PF: predicated region fallthrough
CT: control target
= control target key end

     0   :  { %s1302_s24 = smov 0   ;;  %s1458_s0 = inlined_call_operand.vmem [shape: bf16[2,8,32], index: 0, kind: input, shape index: {}]   ;;  %s1459_s1 = inlined_call_operand.vmem [shape: bf16[2,8,32], index: 1, kind: input, shape index: {}]   ;;  %s1460_s2 = inlined_call_operand.vmem [shape: bf16[2,8,32], index: 2, kind: input, shape index: {}]   ;;  %s1461_s3 = inlined_call_operand.vmem [shape: s32[1,8,8], index: 3, kind: input, shape index: {}]   ;;  %s1462_s4 = inlined_call_operand.vmem [shape: bf16[32,32], index: 4, kind: input, shape index: {}]   ;;  %s1463_s5 = inlined_call_operand.vmem [shape: f32[1,32], index: 5, kind: input, shape index: {}]   ;;  %s1464_s6 = inlined_call_operand.vmem [shape: f32[2,8,32], index: 6, kind: input, shape index: {}]   ;;  %s1465_s7 = inlined_call_operand.vmem [shape: f32[2,8,32], index: 7, kind: output, shape index: {}]  }
   0x1 LB: > { %s1080_s25 = sadd.s32 4294967295, %s1255_s24   ;;  %p1084_p0 = scmp.ge.s32.totalorder %s1255_s24, 1  ;;  %s1255_s24 = sphi %s1302_s24, %s17_s24  }
   0x2   : > { %p263_p1 = scmp.lt.s32.totalorder %s1255_s24, 3 }
   0x4   : > { %p264_p2 = pnand %p1084_p0, %p263_p1 }
   0x5   : > { %p305_p3 = scmp.lt.s32.totalorder (!%p264_p2), %s1080_s25, 1  ;;  %v1257_v0 = vmov (!%p264_p2), 0.0   ;;  %vm1258_vm0 = vmmov (!%p264_p2), 0   ;;  %vm343_vm1 = vcmask (!%p264_p2), 64512   ;;  %v1337_v4 = vld [vmem:[%s1461_s3] sm:$0xff] (!%p264_p2)  ;;  %s1259_s12 = smov (!%p264_p2), 120  }
   0x6   : > { %267 = sbr.rel (%p264_p2) target bundleno = 2071 (0x817), region = 48  ;;  %1132 = vmatprep.subr.bf16.mxu0 (!%p264_p2), %v1257_v0  ;;  %1134 = vmatprep.mubr.msk.bf16.mxu0 (!%p264_p2), %vm1258_vm0, %v1257_v0  ;;  %vm391_vm2 = vcmp.eq.s32.totalorder (!%p264_p2), %v1337_v4, 0  ;;  %s1260_s13 = smov (!%p264_p2), 112   ;;  %vm408_vm3 = vcmask (!%p264_p2), 1043456   ;;  %v330_v31 = vld [vmem:[%s1462_s4] sm:$0xf] (!%p264_p2) }
   0x7   : > { %1144 = vmatprep.subr.bf16.mxu1 (!%p264_p2), %v1257_v0  ;;  %1146 = vmatprep.mubr.msk.bf16.mxu1 (!%p264_p2), %vm1258_vm0, %v1257_v0  ;;  %v457_v32 = vsel (!%p264_p2), %vm408_vm3, %v330_v31, 0  ;;  %s1261_s19 = smov (!%p264_p2), 104   ;;  %vm989_vm4 = vcmask (!%p264_p2), 261120  }
   0x8   : > { %1145 = vmatpush3.bf16.msra.mxu1 (!%p264_p2), %v457_v32 }
   0x9   : > { %1156 = vmatprep.subr.bf16.mxu1 (!%p264_p2), %v1257_v0 }
   0xd   : > { %s1467_s25 = smov (!%p305_p3, %s1080_s25), 1 }
   0xe   : > { %s1319_s26 = sshll.u32 %s1467_s25, 2  ;;  %s1088_s28 = sshll.u32 %s1467_s25, 3 }
   0xf   : > { %s312_s29 = scalar_lea.vmem %s1459_s1, %s1319_s26  ;;  %s308_s9 = scalar_lea.vmem %s1458_s0, %s1319_s26 }
  0x10   : > { %v327_v1 = vld [vmem:[%s312_s29] sm:$0xf]  ;;  %s316_s16 = scalar_lea.vmem %s1460_s2, %s1319_s26  ;;  %s320_s8 = scalar_lea.vmem %s1464_s6, %s1088_s28 }
  0x11   : > { %v348_v2 = vsel %vm343_vm1, %v327_v1, 0  ;;  %v326_v3 = vld [vmem:[%s308_s9] sm:$0xf]  ;;  %v1343_v12 = vcombine.low %v327_v1, %v327_v1 }
  0x12   : > { %1133 = vmatpush3.bf16.xpose.msra.mxu0 %v348_v2  ;;  %v1347_v13 = vcombine.low %v326_v3, %v326_v3  ;;  %v328_v19 = vld [vmem:[%s316_s16] sm:$0xf] }
  0x13   : > { %1138 = vmatprep.subr.bf16.mxu0 %v1257_v0  ;;  %508 = vrot.lane.b32.xlu1 %v1343_v12, %s1259_s12  ;;  %v410_v20 = vsel %vm408_vm3, %v328_v19, 0  ;;  %v1386_v49 = vcombine.low %v328_v19, %v328_v19 }
  0x17   : > { %503 = vrot.lane.b32.xlu1 %v1347_v13, %s1259_s12 }
  0x19   : > { %1135 = vmatmul.mubr.msk.bf16.vlgmr.msra.gmra.mrb[0].mxu0 %vm343_vm1, %v326_v3 }
  0x1a   : > { %1140 = vmatprep.mubr.msk.bf16.mxu0 %vm1258_vm0, %v1257_v0  ;;  %1139 = vmatpush3.bf16.msra.mxu0 %v410_v20 }
  0x1b   : > { %669 = vrot.lane.b32.xlu1 %v1347_v13, %s1260_s13  ;;  %1150 = vmatprep.subr.bf16.mxu0 %v1257_v0 }
  0x85   : > { %v509_v23 = vpop.permute.xlu1 %508 }
  0x86   : > { %v514_v25 = vsel %vm343_vm1, %v509_v23, 0 }
  0x89   : > { %v504_v28 = vpop.permute.xlu1 %503 }
  0x8d   : > { %v670_v30 = vpop.permute.xlu1 %669 }
  0xec   : > { %v384_v5 = vpop.f32.mrb[0].mxu0 }
  0xed   : > { %v390_v6 = vmul.f32 0.35355338, %v384_v5  ;;  %v1136_v7 = vpop.f32.mrb[1].mxu0 }
  0xee   : > { %v387_v8 = vpop.f32.mrb[2].mxu0 }
  0xef   : > { %v1137_v9 = vpop.f32.mrb[3].mxu0  ;;  %v392_v10 = vsel %vm391_vm2, -1e+09, %v390_v6 }
  0xf0   : > { %v393_v11 = vsel %vm343_vm1, %v392_v10, -inf }
  0xf1   : > { %394 = vmax.xlane.f32.xlu0 %v393_v11 }
 0x17e   : > { %v395_v14 = vpop.xlane.xlu0 %394 }
 0x17f   : > { %v396_v15 = vsub.f32 %v392_v10, %v395_v14 }
 0x181   : > { %v397_v16 = vmul.f32 1.442695, %v396_v15 }
 0x183   : > { %1233 = vpow2.f32 %v397_v16  ;;  %v331_v16 = vld [vmem:[%s1462_s4 + $0x4] sm:$0xf] }
 0x18d   : > { %v1234_v17 = vpop.eup %1233 }
 0x18e   : > { %v399_v18 = vsel %vm343_vm1, %v1234_v17, 0.0 }
 0x18f   : > { %400 = vadd.xlane.f32.xlu0 %v399_v18 }
 0x1a5   : > { %671 = vrot.lane.b32.xlu0 %v1343_v12, %s1260_s13 }
 0x21c   : > { %v401_v21 = vpop.xlane.xlu0 %400 }
 0x21d   : > { %1235 = vrcp.f32 %v401_v21 }
 0x220   : > { %v672_v27 = vpop.permute.xlu0 %671 }
 0x221   : > { %v677_v29 = vsel %vm343_vm1, %v672_v27, 0 }
 0x227   : > { %v1236_v22 = vpop.eup %1235 }
 0x228   : > { %v403_v24 = vmul.f32 %v1236_v22, %v1234_v17  ;;  %v626_v17 = vsel %vm408_vm3, %v331_v16, 0 }
 0x22a   : > { %v404_v26 = vpack.c.bf16 %v403_v24, %v403_v24 }
 0x22c   : > { %1141 = vmatmul.mubr.msk.bf16.vlgmr.msra.gmra.mrb[4].mxu0 %vm343_vm1, %v404_v26 }
 0x22d   : > { %1151 = vmatpush3.bf16.xpose.msra.mxu0 %v514_v25  ;;  %1152 = vmatprep.mubr.msk.bf16.mxu0 %vm1258_vm0, %v1257_v0 }
 0x22e   : > { %1168 = vmatprep.subr.bf16.mxu0 %v1257_v0 }
 0x234   : > { %1153 = vmatmul.mubr.msk.bf16.vlgmr.msra.gmra.mrb[8].mxu0 %vm343_vm1, %v504_v28 }
 0x235   : > { %1169 = vmatpush3.bf16.xpose.msra.mxu0 %v677_v29  ;;  %1170 = vmatprep.mubr.msk.bf16.mxu0 %vm1258_vm0, %v1257_v0  ;;  %v332_v29 = vld [vmem:[%s1462_s4 + $0x8] sm:$0xf] }
 0x236   : > { %1174 = vmatprep.subr.bf16.mxu0 %v1257_v0 }
 0x23c   : > { %1171 = vmatmul.mubr.msk.bf16.vlgmr.msra.gmra.mrb[12].mxu0 %vm343_vm1, %v670_v30 }
 0x23d   : > { %1176 = vmatprep.mubr.msk.bf16.mxu0 %vm1258_vm0, %v1257_v0 }
 0x2ff   : > { %v446_v33 = vpop.f32.mrb[4].mxu0 }
 0x300   : > { %v452_v34 = vpack.c.bf16 %v446_v33, %v446_v33  ;;  %v1142_v35 = vpop.f32.mrb[5].mxu0  ;;  %v786_v33 = vsel %vm408_vm3, %v332_v29, 0 }
 0x301   : > { %v449_v36 = vpop.f32.mrb[6].mxu0 }
 0x302   : > { %v1143_v37 = vpop.f32.mrb[7].mxu0  ;;  %1147 = vmatmul.mubr.msk.bf16.vlgmr.msra.gmra.mrb[0].mxu1 %vm343_vm1, %v452_v34 }
 0x303   : > { %1158 = vmatprep.mubr.msk.bf16.mxu1 %vm1258_vm0, %v1257_v0 }
 0x307   : > { %v550_v38 = vpop.f32.mrb[8].mxu0 }
 0x308   : > { %v1154_v39 = vpop.f32.mrb[9].mxu0  ;;  %v556_v50 = vmul.f32 0.35355338, %v550_v38 }
 0x309   : > { %v553_v40 = vpop.f32.mrb[10].mxu0 }
 0x30a   : > { %v1155_v41 = vpop.f32.mrb[11].mxu0  ;;  %v557_v51 = vsel %vm391_vm2, -1e+09, %v556_v50 }
 0x30b   : > { %v558_v52 = vsel %vm343_vm1, %v557_v51, -inf }
 0x30f   : > { %v713_v42 = vpop.f32.mrb[12].mxu0 }
 0x310   : > { %v719_v43 = vmul.f32 0.35355338, %v713_v42  ;;  %v1172_v44 = vpop.f32.mrb[13].mxu0 }
 0x311   : > { %v716_v45 = vpop.f32.mrb[14].mxu0 }
 0x312   : > { %v1173_v46 = vpop.f32.mrb[15].mxu0  ;;  %v720_v47 = vsel %vm391_vm2, -1e+09, %v719_v43  ;;  %v333_v45 = vld [vmem:[%s1462_s4 + $0xc] sm:$0xf] }
 0x313   : > { %v721_v48 = vsel %vm343_vm1, %v720_v47, -inf }
 0x314   : > { %722 = vmax.xlane.f32.xlu1 %v721_v48  ;;  %v946_v48 = vsel %vm408_vm3, %v333_v45, 0 }
 0x325   : > { %733 = vrot.lane.b32.xlu1 %v1386_v49, %s1260_s13  ;;  %s324_s13 = scalar_lea.vmem %s1465_s7, %s1088_s28 }
 0x329   : > { %829 = vrot.lane.b32.xlu1 %v1347_v13, %s1261_s19 }
 0x34d   : > { %559 = vmax.xlane.f32.xlu1 %v558_v52 }
 0x35e   : > { %573 = vrot.lane.b32.xlu1 %v1386_v49, %s1259_s12 }
 0x3a1   : > { %v723_v53 = vpop.xlane.xlu1 %722 }
 0x3a2   : > { %v724_v54 = vsub.f32 %v720_v47, %v723_v53 }
 0x3a4   : > { %v725_v55 = vmul.f32 1.442695, %v724_v54  ;;  %v334_v54 = vld [vmem:[%s320_s8] sm:$0xff] }
 0x3a5   : > { %v734_v56 = vpop.permute.xlu1 %733 }
 0x3a6   : > { %1237 = vpow2.f32 %v725_v55  ;;  %v739_v57 = vsel %vm408_vm3, %v734_v56, 0  ;;  %v1090_v55 = vld [vmem:[%s1463_s5] ss:$0 sm:$0xff] }
 0x3a7   : > { %1175 = vmatpush3.bf16.msra.mxu0 %v739_v57  ;;  %v342_v56 = vadd.f32 %v1090_v55, %v334_v54 }
 0x3a8   : > { %1186 = vmatprep.subr.bf16.mxu0 %v1257_v0 }
 0x3a9   : > { %v830_v60 = vpop.permute.xlu1 %829 }
 0x3b0   : > { %v1238_v58 = vpop.eup %1237 }
 0x3b1   : > { %v727_v59 = vsel %vm343_vm1, %v1238_v58, 0.0 }
 0x3b2   : > { %728 = vadd.xlane.f32.xlu0 %v727_v59 }
 0x3c8   : > { %831 = vrot.lane.b32.xlu0 %v1343_v12, %s1261_s19 }
 0x3da   : > { %v560_v61 = vpop.xlane.xlu1 %559 }
 0x3db   : > { %v561_v62 = vsub.f32 %v557_v51, %v560_v61 }
 0x3dd   : > { %v562_v63 = vmul.f32 1.442695, %v561_v62 }
 0x3de   : > { %v574_v3 = vpop.permute.xlu1 %573 }
 0x3df   : > { %1239 = vpow2.f32 %v562_v63  ;;  %v579_v5 = vsel %vm408_vm3, %v574_v3, 0 }
 0x3e0   : > { %1157 = vmatpush3.bf16.msra.mxu1 %v579_v5 }
 0x3e1   : > { %1162 = vmatprep.subr.bf16.mxu1 %v1257_v0 }
 0x3e9   : > { %v1240_v1 = vpop.eup %1239 }
 0x3ea   : > { %v564_v2 = vsel %vm343_vm1, %v1240_v1, 0.0 }
 0x3eb   : > { %565 = vadd.xlane.f32.xlu0 %v564_v2 }
 0x43f   : > { %v729_v6 = vpop.xlane.xlu0 %728 }
 0x440   : > { %1241 = vrcp.f32 %v729_v6 }
 0x443   : > { %v832_v8 = vpop.permute.xlu0 %831 }
 0x444   : > { %v837_v10 = vsel %vm343_vm1, %v832_v8, 0 }
 0x44a   : > { %v1242_v7 = vpop.eup %1241 }
 0x44b   : > { %v731_v9 = vmul.f32 %v1242_v7, %v1238_v58 }
 0x44d   : > { %v732_v11 = vpack.c.bf16 %v731_v9, %v731_v9 }
 0x44f   : > { %1177 = vmatmul.mubr.msk.bf16.vlgmr.msra.gmra.mrb[16].mxu0 %vm343_vm1, %v732_v11 }
 0x450   : > { %1187 = vmatpush3.bf16.xpose.msra.mxu0 %v837_v10  ;;  %1188 = vmatprep.mubr.msk.bf16.mxu0 %vm1258_vm0, %v1257_v0 }
 0x457   : > { %1189 = vmatmul.mubr.msk.bf16.vlgmr.msra.gmra.mrb[20].mxu0 %vm343_vm1, %v830_v60 }
 0x478   : > { %v566_v12 = vpop.xlane.xlu0 %565 }
 0x479   : > { %1243 = vrcp.f32 %v566_v12 }
 0x483   : > { %v1244_v13 = vpop.eup %1243 }
 0x484   : > { %v568_v14 = vmul.f32 %v1244_v13, %v1240_v1 }
 0x486   : > { %v569_v15 = vpack.c.bf16 %v568_v14, %v568_v14 }
 0x488   : > { %1159 = vmatmul.mubr.msk.bf16.vlgmr.msra.gmra.mrb[4].mxu1 %vm343_vm1, %v569_v15 }
 0x489   : > { %1164 = vmatprep.mubr.msk.bf16.mxu1 %vm1258_vm0, %v1257_v0  ;;  %1163 = vmatpush3.bf16.msra.mxu1 %v626_v17 }
 0x48a   : > { %1180 = vmatprep.subr.bf16.mxu1 %v1257_v0 }
 0x522   : > { %v775_v18 = vpop.f32.mrb[16].mxu0 }
 0x523   : > { %v1178_v19 = vpop.f32.mrb[17].mxu0  ;;  %v781_v4 = vpack.c.bf16 %v775_v18, %v775_v18 }
 0x524   : > { %v778_v20 = vpop.f32.mrb[18].mxu0 }
 0x525   : > { %v1179_v21 = vpop.f32.mrb[19].mxu0 }
 0x52a   : > { %v873_v22 = vpop.f32.mrb[20].mxu0 }
 0x52b   : > { %v879_v23 = vmul.f32 0.35355338, %v873_v22  ;;  %v1190_v24 = vpop.f32.mrb[21].mxu0 }
 0x52c   : > { %v876_v25 = vpop.f32.mrb[22].mxu0 }
 0x52d   : > { %v1191_v26 = vpop.f32.mrb[23].mxu0  ;;  %v880_v27 = vsel %vm391_vm2, -1e+09, %v879_v23 }
 0x52e   : > { %v881_v28 = vsel %vm343_vm1, %v880_v27, -inf }
 0x52f   : > { %882 = vmax.xlane.f32.xlu0 %v881_v28 }
 0x55b   : > { %v615_v30 = vpop.f32.mrb[4].mxu1 }
 0x55c   : > { %v621_v31 = vpack.c.bf16 %v615_v30, %v615_v30  ;;  %v1160_v32 = vpop.f32.mrb[5].mxu1 }
 0x55d   : > { %v618_v34 = vpop.f32.mrb[6].mxu1 }
 0x55e   : > { %v1161_v35 = vpop.f32.mrb[7].mxu1  ;;  %1165 = vmatmul.mubr.msk.bf16.vlgmr.msra.gmra.mrb[0].mxu1 %vm343_vm1, %v621_v31 }
 0x55f   : > { %1181 = vmatpush3.bf16.msra.mxu1 %v786_v33  ;;  %1182 = vmatprep.mubr.msk.bf16.mxu1 %vm1258_vm0, %v1257_v0 }
 0x560   : > { %1192 = vmatprep.subr.bf16.mxu1 %v1257_v0 }
 0x56a   : > { %1183 = vmatmul.mubr.msk.bf16.vlgmr.msra.gmra.mrb[0].mxu1 %vm343_vm1, %v781_v4 }
 0x56b   : > { %1194 = vmatprep.mubr.msk.bf16.mxu1 %vm1258_vm0, %v1257_v0 }
 0x5bc   : > { %v883_v36 = vpop.xlane.xlu0 %882 }
 0x5bd   : > { %v884_v37 = vsub.f32 %v880_v27, %v883_v36 }
 0x5bf   : > { %v885_v38 = vmul.f32 1.442695, %v884_v37 }
 0x5c1   : > { %1245 = vpow2.f32 %v885_v38 }
 0x5cb   : > { %v1246_v39 = vpop.eup %1245 }
 0x5cc   : > { %v887_v40 = vsel %vm343_vm1, %v1246_v39, 0.0 }
 0x5cd   : > { %888 = vadd.xlane.f32.xlu0 %v887_v40 }
 0x5e3   : > { %893 = vrot.lane.b32.xlu0 %v1386_v49, %s1261_s19 }
 0x65a   : > { %v889_v41 = vpop.xlane.xlu0 %888 }
 0x65b   : > { %1247 = vrcp.f32 %v889_v41 }
 0x65e   : > { %v894_v42 = vpop.permute.xlu0 %893 }
 0x65f   : > { %v899_v43 = vsel %vm408_vm3, %v894_v42, 0 }
 0x660   : > { %1193 = vmatpush3.bf16.msra.mxu1 %v899_v43 }
 0x661   : > { %1198 = vmatprep.subr.bf16.mxu1 %v1257_v0 }
 0x665   : > { %v1248_v44 = vpop.eup %1247 }
 0x666   : > { %v891_v46 = vmul.f32 %v1248_v44, %v1246_v39 }
 0x668   : > { %v892_v47 = vpack.c.bf16 %v891_v46, %v891_v46 }
 0x66a   : > { %1195 = vmatmul.mubr.msk.bf16.vlgmr.msra.gmra.mrb[8].mxu1 %vm343_vm1, %v892_v47 }
 0x66b   : > { %1199 = vmatpush3.bf16.msra.mxu1 %v946_v48  ;;  %1200 = vmatprep.mubr.msk.bf16.mxu1 %vm1258_vm0, %v1257_v0 }
 0x73d   : > { %v935_v49 = vpop.f32.mrb[8].mxu1 }
 0x73e   : > { %v941_v50 = vpack.c.bf16 %v935_v49, %v935_v49  ;;  %v1196_v51 = vpop.f32.mrb[9].mxu1 }
 0x73f   : > { %v938_v52 = vpop.f32.mrb[10].mxu1 }
 0x740   : > { %v1197_v53 = vpop.f32.mrb[11].mxu1  ;;  %1201 = vmatmul.mubr.msk.bf16.vlgmr.msra.gmra.mrb[0].mxu1 %vm343_vm1, %v941_v50 }
 0x813   : > { %v982_v0 = vpop.f32.mrb[0].mxu1 }
 0x814   : > { %v1204_v57 = vadd.f32 %v982_v0, %v342_v56  ;;  %v1202_v58 = vpop.f32.mrb[1].mxu1 }
 0x815   : > { %v985_v59 = vpop.f32.mrb[2].mxu1 }
 0x816   : > { %990 = vst.msk [vmem:[%s324_s13] sm:$0xff] %vm989_vm4, %v1204_v57  ;;  %v1203_v60 = vpop.f32.mrb[3].mxu1 }
 0x817 PF: > { %s17_s24 = sadd.s32 1, %s1255_s24  }
 0x818   : > { %p14_p4 = scmp.ge.s32.totalorder %s17_s24, 4  }
 0x81a   :  { %16 = sbr.rel (!%p14_p4) target bundleno = 1 (0x1), region = 87 }

// kernel: decoder_layer.11
= control target key start
LH: loop header
LB: loop body
LE: loop exit
PB: predicated region body
PF: predicated region fallthrough
CT: control target
= control target key end

     0   :  { %vm30_vm0 = vcmask 261120   ;;  %s459_s0 = inlined_call_operand.vmem [shape: f32[16,32], index: 0, kind: input, shape index: {}]   ;;  %s460_s1 = inlined_call_operand.vmem [shape: f32[1,32], index: 1, kind: input, shape index: {}]   ;;  %s461_s2 = inlined_call_operand.vmem [shape: f32[1,32], index: 2, kind: input, shape index: {}]   ;;  %s462_s3 = inlined_call_operand.vmem [shape: bf16[32,64], index: 3, kind: input, shape index: {}]   ;;  %s463_s4 = inlined_call_operand.vmem [shape: f32[1,64], index: 4, kind: input, shape index: {}]   ;;  %s464_s5 = inlined_call_operand.vmem [shape: bf16[64,32], index: 5, kind: input, shape index: {}]   ;;  %s465_s6 = inlined_call_operand.vmem [shape: f32[1,32], index: 6, kind: input, shape index: {}]   ;;  %s466_s7 = inlined_call_operand.hbm [shape: f32[16,32], index: 7, kind: output, shape index: {}]  }
   0x1   :  { %v397_v0 = vld [vmem:[%s459_s0] sm:$0xff]  ;;  %v402_v1 = vld [vmem:[%s459_s0 + $0x8] sm:$0xff] }
   0x2   :  { %v31_v2 = vsel %vm30_vm0, %v397_v0, 0.0  ;;  %v34_v3 = vsel %vm30_vm0, %v402_v1, 0.0 }
   0x3   :  { %32 = vadd.xlane.f32.xlu0 %v31_v2 }
   0x4   :  { %12 = vsyncpa [#allocation3], 0  ;;  %v311_v14 = vld [vmem:[%s462_s3] sm:$0xff]   ;;  %v349_v15 = vmov 0.0   ;;  %vm350_vm1 = vmmov 0   ;;  %v312_v16 = vld [vmem:[%s462_s3 + $0x8] sm:$0xff]  }
   0x5   :  { %286 = vmatprep.subr.bf16.mxu0 %v349_v15  ;;  %290 = vmatprep.mubr.msk.bf16.mxu0 %vm350_vm1, %v349_v15  ;;  %v313_v17 = vld [vmem:[%s464_s5] sm:$0xff]   ;;  %v314_v18 = vld [vmem:[%s464_s5 + $0x8] sm:$0xff]   ;;  %v315_v46 = vld [vmem:[%s464_s5 + $0x10] sm:$0xff]   ;;  %vm201_vm6 = vcmask 523264  }
   0x6   :  { %287 = vmatpush3.bf16.msra.mxu0 %v311_v14  ;;  %294 = vmatprep.subr.bf16.mxu1 %v349_v15  ;;  %v266_v35 = vld [vmem:[%s460_s1] ss:$0 sm:$0xff]  ;;  %v316_v47 = vld [vmem:[%s464_s5 + $0x18] sm:$0xff]   ;;  %s351_s5 = smov [#allocation2]  }
   0x7   :  { %35 = vadd.xlane.f32.xlu0 %v34_v3  ;;  %288 = vmatprep.subr.bf16.mxu0 %v349_v15  ;;  %v267_v41 = vld [vmem:[%s461_s2] ss:$0 sm:$0xff] }
   0x8   :  { %302 = vmatprep.mubr.msk.bf16.mxu1 %vm350_vm1, %v349_v15  ;;  %295 = vmatpush3.bf16.msra.mxu1 %v313_v17  ;;  %v268_v48 = vld [vmem:[%s463_s4] ss:$0 sm:$0xff]  ;;  %s255_s4 = sshll.u32 %s351_s5, 4  ;;  %s256_s4 = int_to_ptr.vmem [resolvable:$true] %s255_s4 }
   0x9   :  { %296 = vmatprep.subr.bf16.mxu1 %v349_v15  ;;  %v272_v58 = vld [vmem:[%s465_s6] ss:$0 sm:$0xff]  ;;  %s325_s21 = scalar_lea.vmem %s256_s4, 256  ;;  %p330_p1 = scmp.lt.s32.totalorder %s256_s4, %s256_s4 }
   0xa   :  { %289 = vmatpush3.bf16.msra.mxu0 %v312_v16  ;;  %p326_p0 = scmp.ne.s32.totalorder %s256_s4, %s325_s21  ;;  %p331_p2 = scmp.lt.s32.totalorder %s325_s21, %s325_s21 }
   0xc   :  { %297 = vmatpush3.bf16.msra.mxu1 %v314_v18  ;;  %p332_p3 = por %p331_p2, %p330_p1 }
   0xd   :  { %298 = vmatprep.subr.bf16.mxu1 %v349_v15 }
   0xe   :  { %p333_p4 = pnand %p332_p3, %p326_p0 }
  0x10   :  { %299 = vmatpush3.bf16.msra.mxu1 %v315_v46 }
  0x11   :  { %300 = vmatprep.subr.bf16.mxu1 %v349_v15 }
  0x14   :  { %301 = vmatpush3.bf16.msra.mxu1 %v316_v47 }
  0x90   :  { %v33_v4 = vpop.xlane.xlu0 %32 }
  0x91   :  { %v38_v5 = vmul.f32 0.03125, %v33_v4 }
  0x93   :  { %v40_v6 = vsub.f32 %v397_v0, %v38_v5 }
  0x94   :  { %v36_v7 = vpop.xlane.xlu0 %35 }
  0x95   :  { %v39_v8 = vmul.f32 0.03125, %v36_v7  ;;  %v42_v9 = vmul.f32 %v40_v6, %v40_v6  ;;  %v78_v37 = vmul.f32 %v266_v35, %v40_v6 }
  0x97   :  { %v41_v10 = vsub.f32 %v402_v1, %v39_v8  ;;  %v44_v11 = vsel %vm30_vm0, %v42_v9, 0.0 }
  0x98   :  { %45 = vadd.xlane.f32.xlu1 %v44_v11 }
  0x99   :  { %v43_v12 = vmul.f32 %v41_v10, %v41_v10  ;;  %v79_v38 = vmul.f32 %v266_v35, %v41_v10 }
  0x9b   :  { %v47_v13 = vsel %vm30_vm0, %v43_v12, 0.0 }
  0x9c   :  { %48 = vadd.xlane.f32.xlu1 %v47_v13 }
 0x125   :  { %v46_v19 = vpop.xlane.xlu1 %45 }
 0x126   :  { %v51_v20 = vmul.f32 0.032258064, %v46_v19 }
 0x128   :  { %317 = vrsqrt.f32 %v51_v20  ;;  %vm55_vm2 = vcmp.eq.f32.partialorder %v51_v20, inf  ;;  %v58_v25 = vand.u32 2147483648, %v51_v20  ;;  %vm57_vm3 = vcmp.eq.f32.partialorder %v51_v20, 0.0 }
 0x129   :  { %v49_v21 = vpop.xlane.xlu1 %48 }
 0x12a   :  { %v52_v22 = vmul.f32 0.032258064, %v49_v21 }
 0x12c   :  { %319 = vrsqrt.f32 %v52_v22  ;;  %vm62_vm4 = vcmp.eq.f32.partialorder %v52_v22, inf  ;;  %v65_v31 = vand.u32 2147483648, %v52_v22  ;;  %vm64_vm5 = vcmp.eq.f32.partialorder %v52_v22, 0.0 }
 0x132   :  { %v318_v23 = vpop.eup %317 }
 0x133   :  { %v54_v24 = vmul.f32 %v318_v23, %v51_v20 }
 0x135   :  { %v56_v26 = vsel %vm55_vm2, %v51_v20, %v54_v24 }
 0x136   :  { %v320_v27 = vpop.eup %319  ;;  %v59_v28 = vsel %vm57_vm3, %v58_v25, %v56_v26 }
 0x137   :  { %v67_v29 = vadd.f32 1e-06, %v59_v28  ;;  %v61_v30 = vmul.f32 %v320_v27, %v52_v22 }
 0x139   :  { %321 = vrcp.f32 %v67_v29  ;;  %v63_v32 = vsel %vm62_vm4, %v52_v22, %v61_v30 }
 0x13a   :  { %v66_v33 = vsel %vm64_vm5, %v65_v31, %v63_v32 }
 0x13b   :  { %v68_v34 = vadd.f32 1e-06, %v66_v33 }
 0x13d   :  { %323 = vrcp.f32 %v68_v34 }
 0x143   :  { %v322_v36 = vpop.eup %321 }
 0x144   :  { %v80_v39 = vmul.f32 %v322_v36, %v78_v37 }
 0x146   :  { %v89_v43 = vadd.f32 %v267_v41, %v80_v39 }
 0x147   :  { %v324_v40 = vpop.eup %323 }
 0x148   :  { %v81_v42 = vmul.f32 %v324_v40, %v79_v38 }
 0x14a   :  { %v90_v44 = vadd.f32 %v267_v41, %v81_v42 }
 0x14c   :  { %v91_v45 = vpack.c.bf16 %v90_v44, %v89_v43 }
 0x14e   :  { %291 = vmatmul.mubr.msk.bf16.vlgmr.msra.gmra.mrb[0].mxu0 %vm30_vm0, %v91_v45 }
 0x221   :  { %v152_v49 = vpop.f32.mrb[0].mxu0 }
 0x222   :  { %v153_v50 = vadd.f32 %v268_v48, %v152_v49  ;;  %v292_v51 = vpop.f32.mrb[1].mxu0 }
 0x223   :  { %v155_v52 = vpop.f32.mrb[2].mxu0 }
 0x224   :  { %v156_v53 = vadd.f32 %v268_v48, %v155_v52  ;;  %v293_v54 = vpop.f32.mrb[3].mxu0  ;;  %v159_v55 = vmax.f32 %v153_v50, 0.0 }
 0x226   :  { %v160_v56 = vmax.f32 %v156_v53, 0.0 }
 0x228   :  { %v161_v57 = vpack.c.bf16 %v160_v56, %v159_v55 }
 0x22a   :  { %303 = vmatmul.mubr.msk.bf16.vlgmr.msra.gmra.mrb[0].mxu1 %vm201_vm6, %v161_v57 }
 0x2fd   :  { %v239_v59 = vpop.f32.mrb[0].mxu1 }
 0x2fe   :  { %v240_v60 = vadd.f32 %v272_v58, %v239_v59  ;;  %v304_v61 = vpop.f32.mrb[1].mxu1 }
 0x2ff   :  { %v242_v62 = vpop.f32.mrb[2].mxu1 }
 0x300   :  { %v246_v63 = vadd.f32 %v240_v60, %v397_v0  ;;  %v243_v2 = vadd.f32 %v272_v58, %v242_v62  ;;  %v305_v3 = vpop.f32.mrb[3].mxu1 }
 0x302   :  { %248 = vst.msk [vmem:[#allocation2] sm:$0xff] %vm30_vm0, %v246_v63  ;;  %v247_v4 = vadd.f32 %v243_v2, %v402_v1 }
 0x304   :  { %249 = vst.msk [vmem:[#allocation2 + $0x8] sm:$0xff] %vm30_vm0, %v247_v4 }
 0x305   :  { %336 = shalt.err (!%p333_p4)
}
 0x306   :  { %s337_s23 = scalar_lea.hbm %s466_s7, 256 }
 0x307   :  { %p338_p5 = scmp.ne.s32.totalorder %s466_s7, %s337_s23  ;;  %p341_p6 = scmp.lt.u32.totalorder %s337_s23, %s466_s7 }
 0x309   :  { %p343_p7 = pnand %p341_p6, %p338_p5 }
 0x30b   :  { %346 = shalt.err (!%p343_p7)
}
 0x30c   :  { %s352_s0 = smov 128   ;;  %s353_s28 = smov 8  }
 0x30d   :  { %261 = dma.vmem_to_hbm [thread:$0]  %s256_s4, 256, %s466_s7, [#allocation3], %s352_s0, %s352_s0, %s353_s28  }
 0x30e   :  { %347 = dma.done.wait [#allocation3], 256  }
 0x30f   :  { %348 = vsyncadd [#allocation3], 4294967040 }
 0x310   :  { %265 = vsyncpa [#allocation3], 1 }

</bundles_post_ra>
